<compile_context>
chip_gen: v5e
topology: v5e:2x2
jax: 0.10.0
libtpu: 0.0.40
codegen_flags: <defaults>
</compile_context>

<pallas_src>
import jax
import jax.numpy as jnp
from jax import lax
from jax.experimental import pallas as pl
from jax.experimental.pallas import tpu as pltpu

# ----------------------------- configuration --------------------------------
LATENT_DIM = 16
TOKEN_DIM = 32          # bert_embed_size
N_FEATURE_MAPS = 16
FEATURE_MAP_SIZE = 8
MAX_NUM_WORDS = 8
BATCH = 4
IMG_D, IMG_H, IMG_W = 4, 8, 8
IMG_FLAT = IMG_D * IMG_H * IMG_W
LEAKY_SLOPE = 0.01      # torch.nn.LeakyReLU default
FFN_DIM = 4 * TOKEN_DIM
BS = BATCH * MAX_NUM_WORDS          # flattened token rows

GEN_P_IN = LATENT_DIM + N_FEATURE_MAPS            # 32
GEN_P_D1, GEN_P_D2 = GEN_P_IN // 2, GEN_P_IN // 4  # 16, 8
GEN_R_D1, GEN_R_D2 = LATENT_DIM // 2, LATENT_DIM // 4  # 8, 4

NEG_INF = -1e30
OUT_COLS = 128

# ------------------------- weight-slab layout --------------------------------
def _round8(n):
    return ((n + 7) // 8) * 8


_SLAB_ENTRIES = [
    # name,      rows,                              cols
    ("img_w",    IMG_FLAT,                          N_FEATURE_MAPS * FEATURE_MAP_SIZE),
    ("pe",       BS,                                TOKEN_DIM),
    ("mask",     BS,                                BS),
    ("wqkv",     TOKEN_DIM,                         3 * TOKEN_DIM),
    ("wo",       TOKEN_DIM,                         TOKEN_DIM),
    ("ffn1_w",   TOKEN_DIM,                         FFN_DIM),
    ("ffn2_w",   FFN_DIM,                           TOKEN_DIM),
    ("head1_w",  N_FEATURE_MAPS + MAX_NUM_WORDS,    4 * LATENT_DIM),
    ("head2_w",  4 * LATENT_DIM,                    4 * LATENT_DIM),
    ("gen1_w",   2 * LATENT_DIM + N_FEATURE_MAPS,   GEN_P_D1 + GEN_R_D1),
    ("gen2_w",   GEN_P_D1 + GEN_R_D1,               GEN_P_D2 + GEN_R_D2),
    ("gen3_w",   GEN_P_D2 + GEN_R_D2,               4),
]
_VEC_NAMES = ["img_b", "bqkv", "bo", "ln1_g", "ln1_b", "ffn1_b", "ffn2_b",
              "ln2_g", "ln2_b", "head1_b", "head2_b", "gen1_b", "gen2_b",
              "gen3_b"]

_SLAB_SHAPE = {}
_SLAB_OFF = {}
_row = 0
for _name, _r, _c in _SLAB_ENTRIES:
    _SLAB_SHAPE[_name] = (_r, _c)
    _SLAB_OFF[_name] = _row
    _row += _round8(_r)
_VEC_BASE = _row
_VEC_ROW = {n: _VEC_BASE + i for i, n in enumerate(_VEC_NAMES)}
SLAB_ROWS = _VEC_BASE + _round8(len(_VEC_NAMES))
SLAB_COLS = 128


# ------------------------------ fused kernel ---------------------------------
def vkd_kernel(img_ref, text_ref, eps_ref, slab_ref, out_ref):
    f32 = jnp.float32
    B = img_ref.shape[0]
    S = MAX_NUM_WORDS
    D = TOKEN_DIM
    L = LATENT_DIM

    def W(name):                                   # static slab view -> load
        off = _SLAB_OFF[name]
        r, c = _SLAB_SHAPE[name]
        return slab_ref[off:off + r, 0:c]

    def V(name, cols):                             # (1, cols) bias row
        r = _VEC_ROW[name]
        return slab_ref[r:r + 1, 0:cols]

    def lrelu(x):
        return jnp.where(x > 0, x, LEAKY_SLOPE * x)

    def mm(a, b):
        return jnp.dot(a, b, preferred_element_type=f32)

    def layernorm(x, g, b):
        mean = jnp.mean(x, axis=-1, keepdims=True)
        var = jnp.mean((x - mean) ** 2, axis=-1, keepdims=True)
        return (x - mean) * lax.rsqrt(var + 1e-5) * g + b

    # --- image branch (stand-in backbone) + AdaptiveMaxPool1d(1) + squeeze ---
    # Weight columns were permuted so col = s * N_FEATURE_MAPS + f; the pool
    # over feature_map_size (8 blocks of 16 lanes) is a log2 lane roll-tree.
    # LeakyReLU commutes with max (monotone), so it is applied after the pool.
    y_img = mm(img_ref[...], W("img_w")) + V("img_b", 128)            # (B,128)
    m = jnp.maximum(y_img, pltpu.roll(y_img, 64, axis=1))
    m = jnp.maximum(m, pltpu.roll(m, 32, axis=1))
    m = jnp.maximum(m, pltpu.roll(m, 16, axis=1))
    out_p = lrelu(m[:, 0:N_FEATURE_MAPS])                             # (B,16)

    # --- text branch: PE + transformer encoder layer on flattened tokens -----
    x = text_ref[...] + W("pe")                                       # (BS,D)
    qkv = mm(x, W("wqkv")) + V("bqkv", 3 * D)                         # (BS,3D)
    q = qkv[:, 0:D]            # 1/sqrt(D) already folded into wqkv/bqkv
    k = qkv[:, D:2 * D]
    v = qkv[:, 2 * D:3 * D]

    scores = lax.dot_general(q, k, (((1,), (1,)), ((), ())),
                             preferred_element_type=f32)              # (BS,BS)
    scores = scores + W("mask")                    # block-diagonal batch mask
    scores = scores - jnp.max(scores, axis=-1, keepdims=True)
    p = jnp.exp(scores)
    p = p * pl.reciprocal(jnp.sum(p, axis=-1, keepdims=True), approx=True)
    attn = mm(mm(p, v), W("wo")) + V("bo", D)

    h = layernorm(x + attn, V("ln1_g", D), V("ln1_b", D))             # (BS,D)
    ff = jnp.maximum(mm(h, W("ffn1_w")) + V("ffn1_b", FFN_DIM), 0.0)
    ff = mm(ff, W("ffn2_w")) + V("ffn2_b", D)
    y = layernorm(h + ff, V("ln2_g", D), V("ln2_b", D))               # (BS,D)

    # AdaptiveMaxPool1d(1) over the embedding axis + squeeze -> (B, S)
    out_r = jnp.max(y.reshape(B, S, D), axis=-1)                      # (B,8)

    # --- latent heads: fcp_mu/fc_mu/fcp_var/fc_var as 2 block-diag matmuls ---
    # column layout of g: [mu_p | mu_r | logvar_p | logvar_r]
    out_cat = jnp.concatenate([out_p, out_r], axis=-1)                # (B,24)
    h1 = lrelu(mm(out_cat, W("head1_w")) + V("head1_b", 4 * L))       # (B,64)
    g = lrelu(mm(h1, W("head2_w")) + V("head2_b", 4 * L))             # (B,64)

    # --- reparameterize: mean of 100 draws == eps ~ N(0, 0.01) applied once --
    z = eps_ref[...] * jnp.exp(0.5 * g[:, 2 * L:4 * L]) + g[:, 0:2 * L]  # (B,32)

    # --- generation heads (BN folded; generation_p & generation block-diag) --
    gen_in = jnp.concatenate([z[:, 0:L], out_p, z[:, L:2 * L]], axis=-1)  # (B,48)
    a = lrelu(mm(gen_in, W("gen1_w")) + V("gen1_b", GEN_P_D1 + GEN_R_D1))
    a = lrelu(mm(a, W("gen2_w")) + V("gen2_b", GEN_P_D2 + GEN_R_D2))
    yout = mm(a, W("gen3_w")) + V("gen3_b", 4)                # (B,4)=[yp|ypr]

    # --- single lane-dense packed output: [y_pred|y_predr|mu_p|mu_r|lv_p|lv_r|0]
    pad = jnp.zeros((B, OUT_COLS - (4 + 4 * L)), f32)
    out_ref[...] = jnp.concatenate([yout, g, pad], axis=-1)


# ----------------------------- parameter setup -------------------------------
def init_linear(key, in_dim, out_dim, scale=0.1):
    kw, kb = jax.random.split(key)
    w = jax.random.normal(kw, (in_dim, out_dim), jnp.float32) * scale
    b = jax.random.normal(kb, (out_dim,), jnp.float32) * 0.01
    return w, b


def fold_bn(w, b, gamma, beta, run_mean, run_var, eps=1e-5):
    """Fold eval-mode BatchNorm1d into the preceding Linear."""
    scale = gamma / jnp.sqrt(run_var + eps)
    return w * scale[None, :], (b - run_mean) * scale + beta


def init_bn(dim):
    # Freshly initialized BatchNorm1d: gamma=1, beta=0, running stats (0, 1).
    return (jnp.ones((dim,), jnp.float32), jnp.zeros((dim,), jnp.float32),
            jnp.zeros((dim,), jnp.float32), jnp.ones((dim,), jnp.float32))


def init_params(key):
    ks = jax.random.split(key, 32)
    p = {}
    # Stand-in image feature extractor (see TODO at top of file).
    p["img_feat"] = init_linear(ks[0], IMG_FLAT,
                                N_FEATURE_MAPS * FEATURE_MAP_SIZE)
    # Transformer encoder layer (single head, post-norm).
    p["wq"] = init_linear(ks[1], TOKEN_DIM, TOKEN_DIM)
    p["wk"] = init_linear(ks[2], TOKEN_DIM, TOKEN_DIM)
    p["wv"] = init_linear(ks[3], TOKEN_DIM, TOKEN_DIM)
    p["wo"] = init_linear(ks[4], TOKEN_DIM, TOKEN_DIM)
    p["ffn1"] = init_linear(ks[5], TOKEN_DIM, FFN_DIM)
    p["ffn2"] = init_linear(ks[6], FFN_DIM, TOKEN_DIM)
    p["ln1"] = (jnp.ones((TOKEN_DIM,), jnp.float32),
                jnp.zeros((TOKEN_DIM,), jnp.float32))
    p["ln2"] = (jnp.ones((TOKEN_DIM,), jnp.float32),
                jnp.zeros((TOKEN_DIM,), jnp.float32))
    # fc_mu / fc_var (text branch): Linear(max_num_words, L) -> Linear(L, L)
    p["fc_mu"] = (init_linear(ks[7], MAX_NUM_WORDS, LATENT_DIM),
                  init_linear(ks[8], LATENT_DIM, LATENT_DIM))
    p["fc_var"] = (init_linear(ks[9], MAX_NUM_WORDS, LATENT_DIM),
                   init_linear(ks[10], LATENT_DIM, LATENT_DIM))
    # fcp_mu / fcp_var (image branch): Linear(n_feature_maps, L) -> Linear(L, L)
    p["fcp_mu"] = (init_linear(ks[11], N_FEATURE_MAPS, LATENT_DIM),
                   init_linear(ks[12], LATENT_DIM, LATENT_DIM))
    p["fcp_var"] = (init_linear(ks[13], N_FEATURE_MAPS, LATENT_DIM),
                    init_linear(ks[14], LATENT_DIM, LATENT_DIM))

    # generation: input L -> L/2 -> L/4 -> 2 (BN folded, eval mode).
    def gen_head(key_base, in_dim):
        dims = [in_dim // 2, in_dim // 4]
        kk = jax.random.split(key_base, 3)
        layers = []
        d_in = in_dim
        for i, d in enumerate(dims):
            w, b = init_linear(kk[i], d_in, d)
            w, b = fold_bn(w, b, *init_bn(d))
            layers.append((w, b))
            d_in = d
        layers.append(init_linear(kk[2], d_in, 2))
        return layers

    p["generation"] = gen_head(ks[15], LATENT_DIM)
    p["generation_p"] = gen_head(ks[16], LATENT_DIM + N_FEATURE_MAPS)
    return p


def positional_encoding(seq_len, dim):
    pos = jnp.arange(seq_len, dtype=jnp.float32)[:, None]
    i = jnp.arange(dim, dtype=jnp.float32)[None, :]
    angle = pos / jnp.power(10000.0, (2.0 * jnp.floor(i / 2.0)) / dim)
    pe = jnp.where(jnp.mod(jnp.arange(dim)[None, :], 2) == 0,
                   jnp.sin(angle), jnp.cos(angle))
    return pe.astype(jnp.float32)  # (S, D)


def fuse_params(p):
    """Pack every fused weight / bias / constant into one (SLAB_ROWS,128) slab."""
    slab = jnp.zeros((SLAB_ROWS, SLAB_COLS), jnp.float32)

    def put(name, w):
        nonlocal slab
        r, c = w.shape
        off = _SLAB_OFF[name]
        slab = slab.at[off:off + r, 0:c].set(w.astype(jnp.float32))

    def put_vec(name, v):
        nonlocal slab
        v = jnp.ravel(v).astype(jnp.float32)
        slab = slab.at[_VEC_ROW[name], 0:v.shape[0]].set(v)

    # image stand-in: permute columns so col = s * N_FEATURE_MAPS + f
    w, b = p["img_feat"]
    put("img_w", w.reshape(IMG_FLAT, N_FEATURE_MAPS, FEATURE_MAP_SIZE)
                  .transpose(0, 2, 1).reshape(IMG_FLAT, -1))
    put_vec("img_b", b.reshape(N_FEATURE_MAPS, FEATURE_MAP_SIZE).T.reshape(-1))

    # positional encoding tiled to the flattened (B*S, D) token layout
    put("pe", jnp.tile(positional_encoding(MAX_NUM_WORDS, TOKEN_DIM),
                       (BATCH, 1)))

    # block-diagonal additive attention mask (tokens attend within their batch)
    row = jnp.arange(BS) // MAX_NUM_WORDS
    put("mask", jnp.where(row[:, None] == row[None, :], 0.0,
                          NEG_INF).astype(jnp.float32))

    # fused q/k/v projection; 1/sqrt(D) folded into the q columns
    scale = 1.0 / (TOKEN_DIM ** 0.5)
    wq, bq = p["wq"]; wk, bk = p["wk"]; wv, bv = p["wv"]
    put("wqkv", jnp.concatenate([wq * scale, wk, wv], axis=1))
    put_vec("bqkv", jnp.concatenate([bq * scale, bk, bv]))
    put("wo", p["wo"][0]);      put_vec("bo", p["wo"][1])
    put_vec("ln1_g", p["ln1"][0]); put_vec("ln1_b", p["ln1"][1])
    put("ffn1_w", p["ffn1"][0]);   put_vec("ffn1_b", p["ffn1"][1])
    put("ffn2_w", p["ffn2"][0]);   put_vec("ffn2_b", p["ffn2"][1])
    put_vec("ln2_g", p["ln2"][0]); put_vec("ln2_b", p["ln2"][1])

    # latent heads -> two block-diagonal matmuls.
    # h1 / g column layout: [ *_p_mu(16) | *_r_mu(16) | *_p_var(16) | *_r_var(16) ]
    (pm1w, pm1b), (pm2w, pm2b) = p["fcp_mu"]
    (pv1w, pv1b), (pv2w, pv2b) = p["fcp_var"]
    (rm1w, rm1b), (rm2w, rm2b) = p["fc_mu"]
    (rv1w, rv1b), (rv2w, rv2b) = p["fc_var"]
    F, Sw, Ld = N_FEATURE_MAPS, MAX_NUM_WORDS, LATENT_DIM
    w1 = jnp.zeros((F + Sw, 4 * Ld), jnp.float32)
    w1 = w1.at[0:F, 0:Ld].set(pm1w).at[0:F, 2 * Ld:3 * Ld].set(pv1w)
    w1 = w1.at[F:F + Sw, Ld:2 * Ld].set(rm1w).at[F:F + Sw, 3 * Ld:4 * Ld].set(rv1w)
    put("head1_w", w1)
    put_vec("head1_b", jnp.concatenate([pm1b, rm1b, pv1b, rv1b]))
    w2 = jnp.zeros((4 * Ld, 4 * Ld), jnp.float32)
    w2 = w2.at[0:Ld, 0:Ld].set(pm2w).at[Ld:2 * Ld, Ld:2 * Ld].set(rm2w)
    w2 = w2.at[2 * Ld:3 * Ld, 2 * Ld:3 * Ld].set(pv2w)
    w2 = w2.at[3 * Ld:4 * Ld, 3 * Ld:4 * Ld].set(rv2w)
    put("head2_w", w2)
    put_vec("head2_b", jnp.concatenate([pm2b, rm2b, pv2b, rv2b]))

    # generation heads fused layer-by-layer block-diagonally.
    # gen_in layout: [ z_p(16) | out_p(16) | z_r(16) ]
    (gpw1, gpb1), (gpw2, gpb2), (gpw3, gpb3) = p["generation_p"]
    (gw1, gb1), (gw2, gb2), (gw3, gb3) = p["generation"]
    g1 = jnp.zeros((2 * Ld + F, GEN_P_D1 + GEN_R_D1), jnp.float32)
    g1 = g1.at[0:Ld + F, 0:GEN_P_D1].set(gpw1).at[Ld + F:, GEN_P_D1:].set(gw1)
    put("gen1_w", g1)
    put_vec("gen1_b", jnp.concatenate([gpb1, gb1]))
    g2 = jnp.zeros((GEN_P_D1 + GEN_R_D1, GEN_P_D2 + GEN_R_D2), jnp.float32)
    g2 = g2.at[0:GEN_P_D1, 0:GEN_P_D2].set(gpw2).at[GEN_P_D1:, GEN_P_D2:].set(gw2)
    put("gen2_w", g2)
    put_vec("gen2_b", jnp.concatenate([gpb2, gb2]))
    g3 = jnp.zeros((GEN_P_D2 + GEN_R_D2, 4), jnp.float32)
    g3 = g3.at[0:GEN_P_D2, 0:2].set(gpw3).at[GEN_P_D2:, 2:4].set(gw3)
    put("gen3_w", g3)
    put_vec("gen3_b", jnp.concatenate([gpb3, gb3]))

    return slab


# ----------------------------- model forward ---------------------------------
def vkd_forward(slab, img_input, text_input, rng_key):
    B = img_input.shape[0]
    S = text_input.shape[1]
    L = LATENT_DIM
    img_flat = img_input.reshape(B, -1)                    # (B, 256)
    text_flat = text_input.reshape(B * S, -1)              # (B*S, 32)

    # Mean of 100 iid N(0,1) draws ~ N(0, 0.01): single scaled draw
    # (distributionally equivalent to the reference's 100-draw average).
    eps = 0.1 * jax.random.normal(rng_key, (B, 2 * L), jnp.float32)  # [eps_p|eps_r]

    vmem = pl.BlockSpec(memory_space=pltpu.MemorySpace.VMEM)
    packed = pl.pallas_call(
        vkd_kernel,
        out_shape=jax.ShapeDtypeStruct((B, OUT_COLS), jnp.float32),
        in_specs=[vmem, vmem, vmem, vmem],
        out_specs=vmem,
    )(img_flat, text_flat, eps, slab)

    # host-side unpack of the single lane-dense output
    y_pred   = packed[:, 0:2]
    y_predr  = packed[:, 2:4]
    mu_p     = packed[:, 4:4 + L]
    mu_r     = packed[:, 4 + L:4 + 2 * L]
    logvar_p = packed[:, 4 + 2 * L:4 + 3 * L]
    logvar_r = packed[:, 4 + 3 * L:4 + 4 * L]
    return y_pred, mu_p, logvar_p, y_predr, mu_r, logvar_r


# ----------------------------------- main -------------------------------------
if __name__ == "__main__":
    root = jax.random.PRNGKey(0)
    k_param, k_img, k_txt, k_eps = jax.random.split(root, 4)

    params = init_params(k_param)
    slab = fuse_params(params)
    img_input = jax.random.normal(k_img, (BATCH, IMG_D, IMG_H, IMG_W),
                                  jnp.float32)
    text_input = jax.random.normal(k_txt, (BATCH, MAX_NUM_WORDS, TOKEN_DIM),
                                   jnp.float32)

    fwd = jax.jit(vkd_forward)
    outs = fwd(slab, img_input, text_input, k_eps)
    outs = jax.block_until_ready(outs)

    y_pred, mu, logvar, y_predr, mur, logvarr = outs
    assert y_pred.shape == (BATCH, 2)
    assert y_predr.shape == (BATCH, 2)
    assert mu.shape == (BATCH, LATENT_DIM)
    assert logvar.shape == (BATCH, LATENT_DIM)
    assert mur.shape == (BATCH, LATENT_DIM)
    assert logvarr.shape == (BATCH, LATENT_DIM)
    assert all(bool(jnp.all(jnp.isfinite(o))) for o in outs)
    print("KERNEL_OK")
</pallas_src>

<mosaic_0001>
module attributes {stable_mosaic.version = 11 : i64} {
  func.func @vkd_kernel(%arg0: memref<4x256xf32, #tpu.memory_space<vmem>>, %arg1: memref<32x32xf32, #tpu.memory_space<vmem>>, %arg2: memref<4x32xf32, #tpu.memory_space<vmem>>, %arg3: memref<736x128xf32, #tpu.memory_space<vmem>>, %arg4: memref<4x128xf32, #tpu.memory_space<vmem>>) attributes {dimension_semantics = [], scalar_prefetch = 0 : i64, scratch_operands = 0 : i64, tpu.core_type = #tpu.core_type<tc>} {
    %c0 = arith.constant 0 : index
    %c0_0 = arith.constant 0 : index
    %0 = vector.load %arg0[%c0, %c0_0] : memref<4x256xf32, #tpu.memory_space<vmem>>, vector<4x256xf32>
    %c0_1 = arith.constant 0 : index
    %c0_2 = arith.constant 0 : index
    %1 = vector.load %arg3[%c0_1, %c0_2] : memref<736x128xf32, #tpu.memory_space<vmem>>, vector<256x128xf32>
    %cst = arith.constant dense<0.000000e+00> : vector<4x128xf32>
    %2 = tpu.matmul %0, %1, %cst {dimension_numbers = #tpu.dot_dimension_numbers<[1], [0], [0], [1], [0, 0, 1, 1], [], []>} : vector<4x256xf32>, vector<256x128xf32>, vector<4x128xf32> -> vector<4x128xf32>
    %c720 = arith.constant 720 : index
    %c0_3 = arith.constant 0 : index
    %3 = vector.load %arg3[%c720, %c0_3] : memref<736x128xf32, #tpu.memory_space<vmem>>, vector<1x128xf32>
    %4 = vector.broadcast %3 : vector<1x128xf32> to vector<4x128xf32>
    %5 = arith.addf %2, %4 : vector<4x128xf32>
    %c64_i32 = arith.constant 64 : i32
    %6 = tpu.dynamic_rotate %5 by %c64_i32 dim 1 : vector<4x128xf32>, i32 -> vector<4x128xf32>
    %7 = arith.maximumf %5, %6 : vector<4x128xf32>
    %c32_i32 = arith.constant 32 : i32
    %8 = tpu.dynamic_rotate %7 by %c32_i32 dim 1 : vector<4x128xf32>, i32 -> vector<4x128xf32>
    %9 = arith.maximumf %7, %8 : vector<4x128xf32>
    %c16_i32 = arith.constant 16 : i32
    %10 = tpu.dynamic_rotate %9 by %c16_i32 dim 1 : vector<4x128xf32>, i32 -> vector<4x128xf32>
    %11 = arith.maximumf %9, %10 : vector<4x128xf32>
    %12 = vector.extract_strided_slice %11 {offsets = [0, 0], sizes = [4, 16], strides = [1, 1]} : vector<4x128xf32> to vector<4x16xf32>
    %cst_4 = arith.constant 0.000000e+00 : f32
    %13 = vector.broadcast %cst_4 : f32 to vector<4x16xf32>
    %14 = arith.cmpf ogt, %12, %13 : vector<4x16xf32>
    %cst_5 = arith.constant 0.00999999977 : f32
    %15 = vector.broadcast %cst_5 : f32 to vector<4x16xf32>
    %16 = arith.mulf %15, %12 : vector<4x16xf32>
    %17 = arith.select %14, %12, %16 : vector<4x16xi1>, vector<4x16xf32>
    %c0_6 = arith.constant 0 : index
    %c0_7 = arith.constant 0 : index
    %18 = vector.load %arg1[%c0_6, %c0_7] : memref<32x32xf32, #tpu.memory_space<vmem>>, vector<32x32xf32>
    %c256 = arith.constant 256 : index
    %c0_8 = arith.constant 0 : index
    %19 = vector.load %arg3[%c256, %c0_8] : memref<736x128xf32, #tpu.memory_space<vmem>>, vector<32x32xf32>
    %20 = arith.addf %18, %19 : vector<32x32xf32>
    %c320 = arith.constant 320 : index
    %c0_9 = arith.constant 0 : index
    %21 = vector.load %arg3[%c320, %c0_9] : memref<736x128xf32, #tpu.memory_space<vmem>>, vector<32x96xf32>
    %cst_10 = arith.constant dense<0.000000e+00> : vector<32x96xf32>
    %22 = tpu.matmul %20, %21, %cst_10 {dimension_numbers = #tpu.dot_dimension_numbers<[1], [0], [0], [1], [0, 0, 1, 1], [], []>} : vector<32x32xf32>, vector<32x96xf32>, vector<32x96xf32> -> vector<32x96xf32>
    %c721 = arith.constant 721 : index
    %c0_11 = arith.constant 0 : index
    %23 = vector.load %arg3[%c721, %c0_11] : memref<736x128xf32, #tpu.memory_space<vmem>>, vector<1x96xf32>
    %24 = vector.broadcast %23 : vector<1x96xf32> to vector<32x96xf32>
    %25 = arith.addf %22, %24 : vector<32x96xf32>
    %26 = vector.extract_strided_slice %25 {offsets = [0, 0], sizes = [32, 32], strides = [1, 1]} : vector<32x96xf32> to vector<32x32xf32>
    %27 = vector.extract_strided_slice %25 {offsets = [0, 32], sizes = [32, 32], strides = [1, 1]} : vector<32x96xf32> to vector<32x32xf32>
    %28 = vector.extract_strided_slice %25 {offsets = [0, 64], sizes = [32, 32], strides = [1, 1]} : vector<32x96xf32> to vector<32x32xf32>
    %cst_12 = arith.constant dense<0.000000e+00> : vector<32x32xf32>
    %29 = tpu.matmul %26, %27, %cst_12 {dimension_numbers = #tpu.dot_dimension_numbers<[1], [1], [0], [0], [0, 0, 1, 0], [], []>} : vector<32x32xf32>, vector<32x32xf32>, vector<32x32xf32> -> vector<32x32xf32>
    %c288 = arith.constant 288 : index
    %c0_13 = arith.constant 0 : index
    %30 = vector.load %arg3[%c288, %c0_13] : memref<736x128xf32, #tpu.memory_space<vmem>>, vector<32x32xf32>
    %31 = arith.addf %29, %30 : vector<32x32xf32>
    %cst_14 = arith.constant dense<0xFF800000> : vector<32xf32>
    %32 = vector.multi_reduction <maximumf>, %31, %cst_14 [1] : vector<32x32xf32> to vector<32xf32>
    %33 = vector.shape_cast %32 : vector<32xf32> to vector<32x1xf32>
    %34 = vector.broadcast %33 : vector<32x1xf32> to vector<32x32xf32>
    %35 = arith.subf %31, %34 : vector<32x32xf32>
    %36 = math.exp %35 : vector<32x32xf32>
    %cst_15 = arith.constant dense<0.000000e+00> : vector<32xf32>
    %37 = vector.multi_reduction <add>, %36, %cst_15 [1] : vector<32x32xf32> to vector<32xf32>
    %38 = vector.shape_cast %37 : vector<32xf32> to vector<32x1xf32>
    %39 = tpu.reciprocal %38 {approx = true} : vector<32x1xf32> -> vector<32x1xf32>
    %40 = vector.broadcast %39 : vector<32x1xf32> to vector<32x32xf32>
    %41 = arith.mulf %36, %40 : vector<32x32xf32>
    %cst_16 = arith.constant dense<0.000000e+00> : vector<32x32xf32>
    %42 = tpu.matmul %41, %28, %cst_16 {dimension_numbers = #tpu.dot_dimension_numbers<[1], [0], [0], [1], [0, 0, 1, 1], [], []>} : vector<32x32xf32>, vector<32x32xf32>, vector<32x32xf32> -> vector<32x32xf32>
    %c352 = arith.constant 352 : index
    %c0_17 = arith.constant 0 : index
    %43 = vector.load %arg3[%c352, %c0_17] : memref<736x128xf32, #tpu.memory_space<vmem>>, vector<32x32xf32>
    %cst_18 = arith.constant dense<0.000000e+00> : vector<32x32xf32>
    %44 = tpu.matmul %42, %43, %cst_18 {dimension_numbers = #tpu.dot_dimension_numbers<[1], [0], [0], [1], [0, 0, 1, 1], [], []>} : vector<32x32xf32>, vector<32x32xf32>, vector<32x32xf32> -> vector<32x32xf32>
    %c722 = arith.constant 722 : index
    %c0_19 = arith.constant 0 : index
    %45 = vector.load %arg3[%c722, %c0_19] : memref<736x128xf32, #tpu.memory_space<vmem>>, vector<1x32xf32>
    %46 = vector.broadcast %45 : vector<1x32xf32> to vector<32x32xf32>
    %47 = arith.addf %44, %46 : vector<32x32xf32>
    %48 = arith.addf %20, %47 : vector<32x32xf32>
    %c723 = arith.constant 723 : index
    %c0_20 = arith.constant 0 : index
    %49 = vector.load %arg3[%c723, %c0_20] : memref<736x128xf32, #tpu.memory_space<vmem>>, vector<1x32xf32>
    %c724 = arith.constant 724 : index
    %c0_21 = arith.constant 0 : index
    %50 = vector.load %arg3[%c724, %c0_21] : memref<736x128xf32, #tpu.memory_space<vmem>>, vector<1x32xf32>
    %cst_22 = arith.constant dense<0.000000e+00> : vector<32xf32>
    %51 = vector.multi_reduction <add>, %48, %cst_22 [1] : vector<32x32xf32> to vector<32xf32>
    %52 = vector.shape_cast %51 : vector<32xf32> to vector<32x1xf32>
    %cst_23 = arith.constant 3.200000e+01 : f32
    %53 = vector.broadcast %cst_23 : f32 to vector<32x1xf32>
    %54 = arith.divf %52, %53 : vector<32x1xf32>
    %55 = vector.broadcast %54 : vector<32x1xf32> to vector<32x32xf32>
    %56 = arith.subf %48, %55 : vector<32x32xf32>
    %57 = arith.mulf %56, %56 : vector<32x32xf32>
    %cst_24 = arith.constant dense<0.000000e+00> : vector<32xf32>
    %58 = vector.multi_reduction <add>, %57, %cst_24 [1] : vector<32x32xf32> to vector<32xf32>
    %59 = vector.shape_cast %58 : vector<32xf32> to vector<32x1xf32>
    %cst_25 = arith.constant 3.200000e+01 : f32
    %60 = vector.broadcast %cst_25 : f32 to vector<32x1xf32>
    %61 = arith.divf %59, %60 : vector<32x1xf32>
    %62 = vector.broadcast %54 : vector<32x1xf32> to vector<32x32xf32>
    %63 = arith.subf %48, %62 : vector<32x32xf32>
    %cst_26 = arith.constant 9.99999974E-6 : f32
    %64 = vector.broadcast %cst_26 : f32 to vector<32x1xf32>
    %65 = arith.addf %61, %64 : vector<32x1xf32>
    %66 = math.rsqrt %65 : vector<32x1xf32>
    %67 = vector.broadcast %66 : vector<32x1xf32> to vector<32x32xf32>
    %68 = arith.mulf %63, %67 : vector<32x32xf32>
    %69 = vector.broadcast %49 : vector<1x32xf32> to vector<32x32xf32>
    %70 = arith.mulf %68, %69 : vector<32x32xf32>
    %71 = vector.broadcast %50 : vector<1x32xf32> to vector<32x32xf32>
    %72 = arith.addf %70, %71 : vector<32x32xf32>
    %c384 = arith.constant 384 : index
    %c0_27 = arith.constant 0 : index
    %73 = vector.load %arg3[%c384, %c0_27] : memref<736x128xf32, #tpu.memory_space<vmem>>, vector<32x128xf32>
    %cst_28 = arith.constant dense<0.000000e+00> : vector<32x128xf32>
    %74 = tpu.matmul %72, %73, %cst_28 {dimension_numbers = #tpu.dot_dimension_numbers<[1], [0], [0], [1], [0, 0, 1, 1], [], []>} : vector<32x32xf32>, vector<32x128xf32>, vector<32x128xf32> -> vector<32x128xf32>
    %c725 = arith.constant 725 : index
    %c0_29 = arith.constant 0 : index
    %75 = vector.load %arg3[%c725, %c0_29] : memref<736x128xf32, #tpu.memory_space<vmem>>, vector<1x128xf32>
    %76 = vector.broadcast %75 : vector<1x128xf32> to vector<32x128xf32>
    %77 = arith.addf %74, %76 : vector<32x128xf32>
    %cst_30 = arith.constant 0.000000e+00 : f32
    %78 = vector.broadcast %cst_30 : f32 to vector<32x128xf32>
    %79 = arith.maximumf %77, %78 : vector<32x128xf32>
    %c416 = arith.constant 416 : index
    %c0_31 = arith.constant 0 : index
    %80 = vector.load %arg3[%c416, %c0_31] : memref<736x128xf32, #tpu.memory_space<vmem>>, vector<128x32xf32>
    %cst_32 = arith.constant dense<0.000000e+00> : vector<32x32xf32>
    %81 = tpu.matmul %79, %80, %cst_32 {dimension_numbers = #tpu.dot_dimension_numbers<[1], [0], [0], [1], [0, 0, 1, 1], [], []>} : vector<32x128xf32>, vector<128x32xf32>, vector<32x32xf32> -> vector<32x32xf32>
    %c726 = arith.constant 726 : index
    %c0_33 = arith.constant 0 : index
    %82 = vector.load %arg3[%c726, %c0_33] : memref<736x128xf32, #tpu.memory_space<vmem>>, vector<1x32xf32>
    %83 = vector.broadcast %82 : vector<1x32xf32> to vector<32x32xf32>
    %84 = arith.addf %81, %83 : vector<32x32xf32>
    %85 = arith.addf %72, %84 : vector<32x32xf32>
    %c727 = arith.constant 727 : index
    %c0_34 = arith.constant 0 : index
    %86 = vector.load %arg3[%c727, %c0_34] : memref<736x128xf32, #tpu.memory_space<vmem>>, vector<1x32xf32>
    %c728 = arith.constant 728 : index
    %c0_35 = arith.constant 0 : index
    %87 = vector.load %arg3[%c728, %c0_35] : memref<736x128xf32, #tpu.memory_space<vmem>>, vector<1x32xf32>
    %cst_36 = arith.constant dense<0.000000e+00> : vector<32xf32>
    %88 = vector.multi_reduction <add>, %85, %cst_36 [1] : vector<32x32xf32> to vector<32xf32>
    %89 = vector.shape_cast %88 : vector<32xf32> to vector<32x1xf32>
    %cst_37 = arith.constant 3.200000e+01 : f32
    %90 = vector.broadcast %cst_37 : f32 to vector<32x1xf32>
    %91 = arith.divf %89, %90 : vector<32x1xf32>
    %92 = vector.broadcast %91 : vector<32x1xf32> to vector<32x32xf32>
    %93 = arith.subf %85, %92 : vector<32x32xf32>
    %94 = arith.mulf %93, %93 : vector<32x32xf32>
    %cst_38 = arith.constant dense<0.000000e+00> : vector<32xf32>
    %95 = vector.multi_reduction <add>, %94, %cst_38 [1] : vector<32x32xf32> to vector<32xf32>
    %96 = vector.shape_cast %95 : vector<32xf32> to vector<32x1xf32>
    %cst_39 = arith.constant 3.200000e+01 : f32
    %97 = vector.broadcast %cst_39 : f32 to vector<32x1xf32>
    %98 = arith.divf %96, %97 : vector<32x1xf32>
    %99 = vector.broadcast %91 : vector<32x1xf32> to vector<32x32xf32>
    %100 = arith.subf %85, %99 : vector<32x32xf32>
    %cst_40 = arith.constant 9.99999974E-6 : f32
    %101 = vector.broadcast %cst_40 : f32 to vector<32x1xf32>
    %102 = arith.addf %98, %101 : vector<32x1xf32>
    %103 = math.rsqrt %102 : vector<32x1xf32>
    %104 = vector.broadcast %103 : vector<32x1xf32> to vector<32x32xf32>
    %105 = arith.mulf %100, %104 : vector<32x32xf32>
    %106 = vector.broadcast %86 : vector<1x32xf32> to vector<32x32xf32>
    %107 = arith.mulf %105, %106 : vector<32x32xf32>
    %108 = vector.broadcast %87 : vector<1x32xf32> to vector<32x32xf32>
    %109 = arith.addf %107, %108 : vector<32x32xf32>
    %110 = vector.shape_cast %109 : vector<32x32xf32> to vector<4x8x32xf32>
    %cst_41 = arith.constant dense<0xFF800000> : vector<4x8xf32>
    %111 = vector.multi_reduction <maximumf>, %110, %cst_41 [2] : vector<4x8x32xf32> to vector<4x8xf32>
    %112 = tpu.concatenate %17, %111 in 1 : vector<4x16xf32>, vector<4x8xf32> -> vector<4x24xf32>
    %c544 = arith.constant 544 : index
    %c0_42 = arith.constant 0 : index
    %113 = vector.load %arg3[%c544, %c0_42] : memref<736x128xf32, #tpu.memory_space<vmem>>, vector<24x64xf32>
    %cst_43 = arith.constant dense<0.000000e+00> : vector<4x64xf32>
    %114 = tpu.matmul %112, %113, %cst_43 {dimension_numbers = #tpu.dot_dimension_numbers<[1], [0], [0], [1], [0, 0, 1, 1], [], []>} : vector<4x24xf32>, vector<24x64xf32>, vector<4x64xf32> -> vector<4x64xf32>
    %c729 = arith.constant 729 : index
    %c0_44 = arith.constant 0 : index
    %115 = vector.load %arg3[%c729, %c0_44] : memref<736x128xf32, #tpu.memory_space<vmem>>, vector<1x64xf32>
    %116 = vector.broadcast %115 : vector<1x64xf32> to vector<4x64xf32>
    %117 = arith.addf %114, %116 : vector<4x64xf32>
    %cst_45 = arith.constant 0.000000e+00 : f32
    %118 = vector.broadcast %cst_45 : f32 to vector<4x64xf32>
    %119 = arith.cmpf ogt, %117, %118 : vector<4x64xf32>
    %cst_46 = arith.constant 0.00999999977 : f32
    %120 = vector.broadcast %cst_46 : f32 to vector<4x64xf32>
    %121 = arith.mulf %120, %117 : vector<4x64xf32>
    %122 = arith.select %119, %117, %121 : vector<4x64xi1>, vector<4x64xf32>
    %c568 = arith.constant 568 : index
    %c0_47 = arith.constant 0 : index
    %123 = vector.load %arg3[%c568, %c0_47] : memref<736x128xf32, #tpu.memory_space<vmem>>, vector<64x64xf32>
    %cst_48 = arith.constant dense<0.000000e+00> : vector<4x64xf32>
    %124 = tpu.matmul %122, %123, %cst_48 {dimension_numbers = #tpu.dot_dimension_numbers<[1], [0], [0], [1], [0, 0, 1, 1], [], []>} : vector<4x64xf32>, vector<64x64xf32>, vector<4x64xf32> -> vector<4x64xf32>
    %c730 = arith.constant 730 : index
    %c0_49 = arith.constant 0 : index
    %125 = vector.load %arg3[%c730, %c0_49] : memref<736x128xf32, #tpu.memory_space<vmem>>, vector<1x64xf32>
    %126 = vector.broadcast %125 : vector<1x64xf32> to vector<4x64xf32>
    %127 = arith.addf %124, %126 : vector<4x64xf32>
    %cst_50 = arith.constant 0.000000e+00 : f32
    %128 = vector.broadcast %cst_50 : f32 to vector<4x64xf32>
    %129 = arith.cmpf ogt, %127, %128 : vector<4x64xf32>
    %cst_51 = arith.constant 0.00999999977 : f32
    %130 = vector.broadcast %cst_51 : f32 to vector<4x64xf32>
    %131 = arith.mulf %130, %127 : vector<4x64xf32>
    %132 = arith.select %129, %127, %131 : vector<4x64xi1>, vector<4x64xf32>
    %c0_52 = arith.constant 0 : index
    %c0_53 = arith.constant 0 : index
    %133 = vector.load %arg2[%c0_52, %c0_53] : memref<4x32xf32, #tpu.memory_space<vmem>>, vector<4x32xf32>
    %134 = vector.extract_strided_slice %132 {offsets = [0, 32], sizes = [4, 32], strides = [1, 1]} : vector<4x64xf32> to vector<4x32xf32>
    %cst_54 = arith.constant 5.000000e-01 : f32
    %135 = vector.broadcast %cst_54 : f32 to vector<4x32xf32>
    %136 = arith.mulf %135, %134 : vector<4x32xf32>
    %137 = math.exp %136 : vector<4x32xf32>
    %138 = arith.mulf %133, %137 : vector<4x32xf32>
    %139 = vector.extract_strided_slice %132 {offsets = [0, 0], sizes = [4, 32], strides = [1, 1]} : vector<4x64xf32> to vector<4x32xf32>
    %140 = arith.addf %138, %139 : vector<4x32xf32>
    %141 = vector.extract_strided_slice %140 {offsets = [0, 0], sizes = [4, 16], strides = [1, 1]} : vector<4x32xf32> to vector<4x16xf32>
    %142 = vector.extract_strided_slice %140 {offsets = [0, 16], sizes = [4, 16], strides = [1, 1]} : vector<4x32xf32> to vector<4x16xf32>
    %143 = tpu.concatenate %141, %17, %142 in 1 : vector<4x16xf32>, vector<4x16xf32>, vector<4x16xf32> -> vector<4x48xf32>
    %c632 = arith.constant 632 : index
    %c0_55 = arith.constant 0 : index
    %144 = vector.load %arg3[%c632, %c0_55] : memref<736x128xf32, #tpu.memory_space<vmem>>, vector<48x24xf32>
    %cst_56 = arith.constant dense<0.000000e+00> : vector<4x24xf32>
    %145 = tpu.matmul %143, %144, %cst_56 {dimension_numbers = #tpu.dot_dimension_numbers<[1], [0], [0], [1], [0, 0, 1, 1], [], []>} : vector<4x48xf32>, vector<48x24xf32>, vector<4x24xf32> -> vector<4x24xf32>
    %c731 = arith.constant 731 : index
    %c0_57 = arith.constant 0 : index
    %146 = vector.load %arg3[%c731, %c0_57] : memref<736x128xf32, #tpu.memory_space<vmem>>, vector<1x24xf32>
    %147 = vector.broadcast %146 : vector<1x24xf32> to vector<4x24xf32>
    %148 = arith.addf %145, %147 : vector<4x24xf32>
    %cst_58 = arith.constant 0.000000e+00 : f32
    %149 = vector.broadcast %cst_58 : f32 to vector<4x24xf32>
    %150 = arith.cmpf ogt, %148, %149 : vector<4x24xf32>
    %cst_59 = arith.constant 0.00999999977 : f32
    %151 = vector.broadcast %cst_59 : f32 to vector<4x24xf32>
    %152 = arith.mulf %151, %148 : vector<4x24xf32>
    %153 = arith.select %150, %148, %152 : vector<4x24xi1>, vector<4x24xf32>
    %c680 = arith.constant 680 : index
    %c0_60 = arith.constant 0 : index
    %154 = vector.load %arg3[%c680, %c0_60] : memref<736x128xf32, #tpu.memory_space<vmem>>, vector<24x12xf32>
    %cst_61 = arith.constant dense<0.000000e+00> : vector<4x12xf32>
    %155 = tpu.matmul %153, %154, %cst_61 {dimension_numbers = #tpu.dot_dimension_numbers<[1], [0], [0], [1], [0, 0, 1, 1], [], []>} : vector<4x24xf32>, vector<24x12xf32>, vector<4x12xf32> -> vector<4x12xf32>
    %c732 = arith.constant 732 : index
    %c0_62 = arith.constant 0 : index
    %156 = vector.load %arg3[%c732, %c0_62] : memref<736x128xf32, #tpu.memory_space<vmem>>, vector<1x12xf32>
    %157 = vector.broadcast %156 : vector<1x12xf32> to vector<4x12xf32>
    %158 = arith.addf %155, %157 : vector<4x12xf32>
    %cst_63 = arith.constant 0.000000e+00 : f32
    %159 = vector.broadcast %cst_63 : f32 to vector<4x12xf32>
    %160 = arith.cmpf ogt, %158, %159 : vector<4x12xf32>
    %cst_64 = arith.constant 0.00999999977 : f32
    %161 = vector.broadcast %cst_64 : f32 to vector<4x12xf32>
    %162 = arith.mulf %161, %158 : vector<4x12xf32>
    %163 = arith.select %160, %158, %162 : vector<4x12xi1>, vector<4x12xf32>
    %c704 = arith.constant 704 : index
    %c0_65 = arith.constant 0 : index
    %164 = vector.load %arg3[%c704, %c0_65] : memref<736x128xf32, #tpu.memory_space<vmem>>, vector<12x4xf32>
    %cst_66 = arith.constant dense<0.000000e+00> : vector<4x4xf32>
    %165 = tpu.matmul %163, %164, %cst_66 {dimension_numbers = #tpu.dot_dimension_numbers<[1], [0], [0], [1], [0, 0, 1, 1], [], []>} : vector<4x12xf32>, vector<12x4xf32>, vector<4x4xf32> -> vector<4x4xf32>
    %c733 = arith.constant 733 : index
    %c0_67 = arith.constant 0 : index
    %166 = vector.load %arg3[%c733, %c0_67] : memref<736x128xf32, #tpu.memory_space<vmem>>, vector<1x4xf32>
    %167 = vector.broadcast %166 : vector<1x4xf32> to vector<4x4xf32>
    %168 = arith.addf %165, %167 : vector<4x4xf32>
    %cst_68 = arith.constant 0.000000e+00 : f32
    %169 = vector.broadcast %cst_68 : f32 to vector<4x60xf32>
    %170 = tpu.concatenate %168, %132, %169 in 1 : vector<4x4xf32>, vector<4x64xf32>, vector<4x60xf32> -> vector<4x128xf32>
    %c0_69 = arith.constant 0 : index
    %c0_70 = arith.constant 0 : index
    %171 = vector.load %arg4[%c0_69, %c0_70] : memref<4x128xf32, #tpu.memory_space<vmem>>, vector<4x128xf32>
    tpu.vector_store %arg4[%c0_69, %c0_70], %170 {strides = array<i32>} : memref<4x128xf32, #tpu.memory_space<vmem>>, vector<4x128xf32>,
    return
  }
}

</mosaic_0001>

<bundles_post_ra>
// kernel: vkd_forward.1
= control target key start
LH: loop header
LB: loop body
LE: loop exit
PB: predicated region body
PF: predicated region fallthrough
CT: control target
= control target key end

     0   :  { %9 = vsyncpa [#allocation3], 0  ;;  %s1062_s18 = smov [#allocation2]   ;;  %s1063_s20 = smov 128   ;;  %s1293_s0 = inlined_call_operand.vmem [shape: f32[4,256], index: 0, kind: input, shape index: {}]   ;;  %s1294_s1 = inlined_call_operand.vmem [shape: f32[32,32], index: 1, kind: input, shape index: {}]   ;;  %s1295_s2 = inlined_call_operand.vmem [shape: f32[4,32], index: 2, kind: input, shape index: {}]   ;;  %s1296_s3 = inlined_call_operand.hbm [shape: f32[736,128], index: 3, kind: input, shape index: {}]   ;;  %s1297_s4 = inlined_call_operand.vmem [shape: f32[4,128], index: 4, kind: output, shape index: {}]  }
   0x1   :  { %s20_s17 = sshll.u32 %s1296_s3, 4  ;;  %s22_s19 = sshll.u32 %s1062_s18, 4  ;;  %s21_s17 = int_to_ptr.hbm [resolvable:$true] %s20_s17  ;;  %s23_s19 = int_to_ptr.vmem [resolvable:$true] %s22_s19 }
   0x2   :  { %s1064_s21 = smov 8  }
   0x3   :  { %28 = dma.hbm_to_vmem [thread:$0]  %s21_s17, 11776, %s23_s19, [#allocation3], %s1063_s20, %s1063_s20, %s1064_s21  }
   0x4   :  { %1060 = dma.done.wait [#allocation3], 11776  }
   0x5   :  { %1061 = vsyncadd [#allocation3], 4294955520  ;;  %v141_v0 = vld [vmem:[#allocation2 + $0x158] sm:$0xff]  ;;  %v140_v1 = vld [vmem:[#allocation2 + $0x150] sm:$0xff]  ;;  %vm144_vm0 = vcmask 261120   ;;  %s1065_s29 = smov 96  }
   0x6   :  { %169 = vmatpush.msra.mxu2 %v141_v0  ;;  %v126_v2 = vld [vmem:[%s1294_s1] sm:$0xff]  ;;  %v130_v3 = vld [vmem:[#allocation2 + $0x100] sm:$0xff]  ;;  %v139_v4 = vld [vmem:[#allocation2 + $0x148] sm:$0xff]  ;;  %s1069_s6 = smov 16   ;;  %s1070_s7 = smov 4  }
   0x7   :  { %v138_v5 = vld [vmem:[#allocation2 + $0x140] sm:$0xff]  ;;  %v1102_v6 = vadd.f32 %v130_v3, %v126_v2  ;;  %v131_v8 = vld [vmem:[#allocation2 + $0x108] sm:$0xff]  ;;  %v132_v11 = vld [vmem:[#allocation2 + $0x110] sm:$0xff] }
   0x8   :  { %170 = vmatpush.msra.mxu2 %v140_v1  ;;  %v127_v7 = vld [vmem:[%s1294_s1 + $0x8] sm:$0xff]  ;;  %v128_v10 = vld [vmem:[%s1294_s1 + $0x10] sm:$0xff]  ;;  %v129_v13 = vld [vmem:[%s1294_s1 + $0x18] sm:$0xff]  ;;  %s1066_s1 = smov 64  }
   0x9   :  { %v1109_v9 = vadd.f32 %v131_v8, %v127_v7  ;;  %v1116_v12 = vadd.f32 %v132_v11, %v128_v10  ;;  %v133_v14 = vld [vmem:[#allocation2 + $0x118] sm:$0xff]  ;;  %v986_v17 = vld [vmem:[#allocation2 + $0x2d1] ss:$0 sm:$0xff]  ;;  %v186_v29 = vld [vmem:[#allocation2 + $0x120] sm:$0xff] }
   0xa   :  { %171 = vmatpush.msra.mxu2 %v139_v4  ;;  %v1123_v15 = vadd.f32 %v133_v14, %v129_v13  ;;  %v187_v33 = vld [vmem:[#allocation2 + $0x128] sm:$0xff]  ;;  %v49_v37 = vld [vmem:[#allocation2 + $0x78] sm:$0xff]  ;;  %v48_v38 = vld [vmem:[#allocation2 + $0x70] sm:$0xff] }
   0xb   :  { %74 = vmatpush.msra.mxu0 %v49_v37  ;;  %v188_v39 = vld [vmem:[#allocation2 + $0x130] sm:$0xff]  ;;  %v47_v40 = vld [vmem:[#allocation2 + $0x68] sm:$0xff]  ;;  %v46_v42 = vld [vmem:[#allocation2 + $0x60] sm:$0xff] }
   0xc   :  { %172 = vmatpush.msra.mxu2 %v138_v5  ;;  %v45_v44 = vld [vmem:[#allocation2 + $0x58] sm:$0xff]  ;;  %v44_v46 = vld [vmem:[#allocation2 + $0x50] sm:$0xff]  ;;  %v43_v53 = vld [vmem:[#allocation2 + $0x48] sm:$0xff] }
   0xd   :  { %937 = vmatmul.msk.f32.vlgmr.msra.gmra.mxu2 %vm144_vm0, %v1102_v6  ;;  %75 = vmatpush.msra.mxu0 %v48_v38  ;;  %v189_v47 = vld [vmem:[#allocation2 + $0x138] sm:$0xff]  ;;  %v42_v54 = vld [vmem:[#allocation2 + $0x40] sm:$0xff]  ;;  %v40_v56 = vld [vmem:[#allocation2 + $0x30] sm:$0xff] }
   0xe   :  { %v41_v55 = vld [vmem:[#allocation2 + $0x38] sm:$0xff]  ;;  %v39_v57 = vld [vmem:[#allocation2 + $0x28] sm:$0xff]  ;;  %v38_v58 = vld [vmem:[#allocation2 + $0x20] sm:$0xff] }
   0xf   :  { %76 = vmatpush.msra.mxu0 %v47_v40  ;;  %v37_v59 = vld [vmem:[#allocation2 + $0x18] sm:$0xff]  ;;  %v36_v60 = vld [vmem:[#allocation2 + $0x10] sm:$0xff]  ;;  %v35_v61 = vld [vmem:[#allocation2 + $0x8] sm:$0xff] }
  0x10   :  { %v34_v62 = vld [vmem:[#allocation2] sm:$0xff]  ;;  %v65_v2 = vld [vmem:[#allocation2 + $0xf8] sm:$0xff]  ;;  %v64_v3 = vld [vmem:[#allocation2 + $0xf0] sm:$0xff] }
  0x11   :  { %77 = vmatpush.msra.mxu0 %v46_v42  ;;  %94 = vmatpush.msra.mxu1 %v65_v2  ;;  %v63_v4 = vld [vmem:[#allocation2 + $0xe8] sm:$0xff]  ;;  %v62_v8 = vld [vmem:[#allocation2 + $0xe0] sm:$0xff]  ;;  %v61_v13 = vld [vmem:[#allocation2 + $0xd8] sm:$0xff] }
  0x12   :  { %v53_v38 = vld [vmem:[#allocation2 + $0x98] sm:$0xff]  ;;  %v52_v40 = vld [vmem:[#allocation2 + $0x90] sm:$0xff] }
  0x13   :  { %78 = vmatpush.msra.mxu0 %v45_v44  ;;  %95 = vmatpush.msra.mxu1 %v64_v3  ;;  %v51_v44 = vld [vmem:[#allocation2 + $0x88] sm:$0xff] }
  0x15   :  { %938 = vmatmul.msk.f32.gmra.mxu2 %vm144_vm0, %v1109_v9  ;;  %79 = vmatpush.msra.mxu0 %v44_v46  ;;  %v50_v46 = vld [vmem:[#allocation2 + $0x80] sm:$0xff] }
  0x16   :  { %96 = vmatpush.msra.mxu1 %v63_v4 }
  0x17   :  { %80 = vmatpush.msra.mxu0 %v43_v53 }
  0x18   :  { %97 = vmatpush.msra.mxu1 %v62_v8 }
  0x19   :  { %81 = vmatpush.msra.mxu0 %v42_v54 }
  0x1a   :  { %98 = vmatpush.msra.mxu1 %v61_v13 }
  0x1b   :  { %82 = vmatpush.msra.mxu0 %v41_v55 }
  0x1d   :  { %939 = vmatmul.msk.f32.gmra.mxu2 %vm144_vm0, %v1116_v12  ;;  %83 = vmatpush.msra.mxu0 %v40_v56 }
  0x1f   :  { %84 = vmatpush.msra.mxu0 %v39_v57 }
  0x21   :  { %85 = vmatpush.msra.mxu0 %v38_v58 }
  0x23   :  { %86 = vmatpush.msra.mxu0 %v37_v59 }
  0x25   :  { %940 = vmatmul.msk.f32.gmra.mxu2 %vm144_vm0, %v1123_v15  ;;  %87 = vmatpush.msra.mxu0 %v36_v60  ;;  %v347_v60 = vld [vmem:[#allocation2 + $0x178] sm:$0xff] }
  0x27   :  { %88 = vmatpush.msra.mxu0 %v35_v61  ;;  %v346_v61 = vld [vmem:[#allocation2 + $0x170] sm:$0xff] }
  0x29   :  { %89 = vmatpush.msra.mxu0 %v34_v62  ;;  %v345_v62 = vld [vmem:[#allocation2 + $0x168] sm:$0xff] }
  0x90   :  { %v174_v16 = vpop.f32.mrf.mxu2 }
  0x91   :  { %v175_v21 = vadd.f32 %v986_v17, %v174_v16  ;;  %v60_v16 = vld [vmem:[#allocation2 + $0xd0] sm:$0xff] }
  0x92   :  { %99 = vmatpush.msra.mxu1 %v60_v16 }
  0x98   :  { %v177_v18 = vpop.f32.mrf.mxu2 }
  0x99   :  { %v178_v19 = vadd.f32 %v986_v17, %v177_v18 }
  0x9b   :  { %196 = vrot.lane.b32.xlu1 %v178_v19, %s1065_s29  ;;  %v981_v52 = vpack.i.bf16 %v175_v21, %v178_v19 }
  0xa0   :  { %v180_v20 = vpop.f32.mrf.mxu2 }
  0xa1   :  { %v181_v24 = vadd.f32 %v986_v17, %v180_v20 }
  0xa3   :  { %194 = vrot.lane.b32.xlu1 %v175_v21, %s1065_s29 }
  0xa8   :  { %v183_v22 = vpop.f32.mrf.mxu2 }
  0xa9   :  { %v184_v23 = vadd.f32 %v986_v17, %v183_v22  ;;  %v59_v17 = vld [vmem:[#allocation2 + $0xc8] sm:$0xff]  ;;  %v58_v22 = vld [vmem:[#allocation2 + $0xc0] sm:$0xff] }
  0xaa   :  { %100 = vmatpush.msra.mxu1 %v59_v17 }
  0xab   :  { %200 = vrot.lane.b32.xlu0 %v184_v23, %s1065_s29  ;;  %v976_v51 = vpack.i.bf16 %v181_v24, %v184_v23 }
  0xac   :  { %101 = vmatpush.msra.mxu1 %v58_v22 }
  0xb3   :  { %198 = vrot.lane.b32.xlu0 %v181_v24, %s1065_s29 }
 0x10d   :  { %v197_v26 = vpop.permute.xlu1 %196 }
 0x115   :  { %v195_v28 = vpop.permute.xlu1 %194 }
 0x11d   :  { %v201_v25 = vpop.permute.xlu0 %200 }
 0x11e   :  { %941 = vmatpush.xpose.msk.msra.mxu3 %vm144_vm0, %v201_v25 }
 0x125   :  { %v199_v27 = vpop.permute.xlu0 %198 }
 0x126   :  { %942 = vmatpush.xpose.msk.msra.mxu3 %vm144_vm0, %v199_v27 }
 0x12a   :  { %943 = vmatpush.xpose.msk.msra.mxu3 %vm144_vm0, %v197_v26  ;;  %v57_v26 = vld [vmem:[#allocation2 + $0xb8] sm:$0xff] }
 0x12b   :  { %102 = vmatpush.msra.mxu1 %v57_v26  ;;  %v1067_v26 = vmov 32.0  }
 0x12e   :  { %944 = vmatpush.xpose.msk.msra.mxu3 %vm144_vm0, %v195_v28  ;;  %v56_v28 = vld [vmem:[#allocation2 + $0xb0] sm:$0xff] }
 0x12f   :  { %103 = vmatpush.msra.mxu1 %v56_v28 }
 0x131   :  { %945 = vmatmul.msk.f32.vlgmr.msra.gmra.mxu3 %vm144_vm0, %v175_v21 }
 0x139   :  { %946 = vmatmul.msk.f32.gmra.mxu3 %vm144_vm0, %v178_v19 }
 0x141   :  { %947 = vmatmul.msk.f32.gmra.mxu3 %vm144_vm0, %v181_v24 }
 0x149   :  { %948 = vmatmul.msk.f32.gmra.mxu3 %vm144_vm0, %v184_v23 }
 0x1b4   :  { %v235_v30 = vpop.f32.mrf.mxu3 }
 0x1b5   :  { %v236_v31 = vadd.f32 %v235_v30, %v186_v29  ;;  %v55_v29 = vld [vmem:[#allocation2 + $0xa8] sm:$0xff] }
 0x1b6   :  { %104 = vmatpush.msra.mxu1 %v55_v29 }
 0x1b7   :  { %v247_v32 = vsel %vm144_vm0, %v236_v31, -inf }
 0x1b8   :  { %248 = vmax.xlane.f32.xlu2 %v247_v32 }
 0x1bc   :  { %v238_v34 = vpop.f32.mrf.mxu3 }
 0x1bd   :  { %v1140_v35 = vadd.f32 %v238_v34, %v187_v33  ;;  %v54_v34 = vld [vmem:[#allocation2 + $0xa0] sm:$0xff] }
 0x1be   :  { %105 = vmatpush.msra.mxu1 %v54_v34 }
 0x1bf   :  { %v250_v36 = vsel %vm144_vm0, %v1140_v35, -inf }
 0x1c0   :  { %251 = vmax.xlane.f32.xlu2 %v250_v36  ;;  %106 = vmatpush.msra.mxu1 %v53_v38 }
 0x1c2   :  { %107 = vmatpush.msra.mxu1 %v52_v40 }
 0x1c4   :  { %v241_v41 = vpop.f32.mrf.mxu3  ;;  %108 = vmatpush.msra.mxu1 %v51_v44 }
 0x1c5   :  { %v1144_v43 = vadd.f32 %v241_v41, %v188_v39 }
 0x1c6   :  { %109 = vmatpush.msra.mxu1 %v50_v46 }
 0x1c7   :  { %v253_v45 = vsel %vm144_vm0, %v1144_v43, -inf }
 0x1c8   :  { %254 = vmax.xlane.f32.xlu0 %v253_v45  ;;  %374 = vmatpush.msrb.mxu1 %v347_v60 }
 0x1ca   :  { %375 = vmatpush.msrb.mxu1 %v346_v61 }
 0x1cc   :  { %v244_v48 = vpop.f32.mrf.mxu3  ;;  %376 = vmatpush.msrb.mxu1 %v345_v62 }
 0x1cd   :  { %v1148_v49 = vadd.f32 %v244_v48, %v189_v47 }
 0x1cf   :  { %v256_v50 = vsel %vm144_vm0, %v1148_v49, -inf }
 0x1d0   :  { %257 = vmax.xlane.f32.xlu1 %v256_v50 }
 0x1d8   :  { %977 = vrot.lane.b32.xlu2 %v976_v51, %s1066_s1 }
 0x1e0   :  { %982 = vrot.lane.b32.xlu2 %v981_v52, %s1066_s1 }
 0x22b   :  { %v249_v63 = vpop.xlane.xlu2 %248 }
 0x22c   :  { %v259_v0 = vsub.f32 %v236_v31, %v249_v63  ;;  %v344_v63 = vld [vmem:[#allocation2 + $0x160] sm:$0xff] }
 0x22d   :  { %377 = vmatpush.msrb.mxu1 %v344_v63 }
 0x22e   :  { %v263_v1 = vmul.f32 1.442695, %v259_v0 }
 0x230   :  { %1000 = vpow2.f32 %v263_v1 }
 0x233   :  { %v252_v5 = vpop.xlane.xlu2 %251 }
 0x234   :  { %v260_v7 = vsub.f32 %v1140_v35, %v252_v5 }
 0x236   :  { %v1155_v10 = vpop.eup %1000  ;;  %v265_v11 = vmul.f32 1.442695, %v260_v7  ;;  %v988_v7 = vld [vmem:[#allocation2 + $0x2d2] ss:$0 sm:$0xff] }
 0x237   :  { %v271_v14 = vsel %vm144_vm0, %v1155_v10, 0.0 }
 0x238   :  { %1002 = vpow2.f32 %v265_v11  ;;  %272 = vadd.xlane.f32.xlu2 %v271_v14 }
 0x23b   :  { %v255_v18 = vpop.xlane.xlu0 %254  ;;  %v978_v19 = vpop.permute.xlu2 %977 }
 0x23c   :  { %v261_v20 = vsub.f32 %v1144_v43, %v255_v18  ;;  %v979_v21 = vunpack.i.l.bf16 %v978_v19  ;;  %v980_v25 = vunpack.i.h.bf16 %v978_v19  ;;  %v33_v43 = vld [vmem:[%s1293_s0] sm:$0xff]  ;;  %s1068_s0 = smov 32  }
 0x23d   :  { %69 = vst [vmem:[#allocation1] ss:$2 sm:$0xff] %v33_v43 }
 0x23e   :  { %v1003_v23 = vpop.eup %1002  ;;  %v267_v24 = vmul.f32 1.442695, %v261_v20  ;;  %327 = vmatpush.msrb.mxu0 %v979_v21 }
 0x23f   :  { %v274_v27 = vsel %vm144_vm0, %v1003_v23, 0.0 }
 0x240   :  { %1004 = vpow2.f32 %v267_v24  ;;  %275 = vadd.xlane.f32.xlu2 %v274_v27  ;;  %328 = vmatpush.msrb.mxu0 %v980_v25 }
 0x243   :  { %v258_v30 = vpop.xlane.xlu1 %257  ;;  %v983_v31 = vpop.permute.xlu2 %982 }
 0x244   :  { %v262_v32 = vsub.f32 %v1148_v49, %v258_v30  ;;  %v984_v33 = vunpack.i.l.bf16 %v983_v31  ;;  %v985_v37 = vunpack.i.h.bf16 %v983_v31  ;;  %v70_v45 = vld.sshfl [vmem:[#allocation1] sm:$0xff pattern:$0x75316420]  ;;  %v71_v47 = vld.sshfl [vmem:[#allocation1 + $0x8] sm:$0xff pattern:$0x75316420] }
 0x245   :  { %90 = vmatmul.f32.vlgmr.msra.gmra.mxu0 %v70_v45  ;;  %110 = vmatmul.f32.vlgmr.msra.gmra.mxu1 %v71_v47 }
 0x246   :  { %v1005_v35 = vpop.eup %1004  ;;  %v269_v36 = vmul.f32 1.442695, %v262_v32  ;;  %329 = vmatpush.msrb.mxu0 %v984_v33  ;;  %v505_v32 = vld [vmem:[#allocation2 + $0x198] sm:$0xff] }
 0x247   :  { %v277_v39 = vsel %vm144_vm0, %v1005_v35, 0.0  ;;  %532 = vmatpush.msrb.mxu2 %v505_v32 }
 0x248   :  { %1006 = vpow2.f32 %v269_v36  ;;  %278 = vadd.xlane.f32.xlu0 %v277_v39  ;;  %330 = vmatpush.msrb.mxu0 %v985_v37 }
 0x24e   :  { %v1007_v41 = vpop.eup %1006 }
 0x24f   :  { %v280_v42 = vsel %vm144_vm0, %v1007_v41, 0.0 }
 0x250   :  { %281 = vadd.xlane.f32.xlu1 %v280_v42 }
 0x2ab   :  { %v273_v48 = vpop.xlane.xlu2 %272 }
 0x2ac   :  { %1008 = vrcp.f32 %v273_v48 }
 0x2b2   :  { %v1009_v49 = vpop.eup %1008 }
 0x2b3   :  { %v276_v50 = vpop.xlane.xlu2 %275  ;;  %v287_v51 = vmul.f32 %v1009_v49, %v1155_v10 }
 0x2b4   :  { %1010 = vrcp.f32 %v276_v50 }
 0x2b5   :  { %949 = vmatmul.msk.f32.vlgmr.msrb.gmra.mxu0 %vm144_vm0, %v287_v51  ;;  %v504_v51 = vld [vmem:[#allocation2 + $0x190] sm:$0xff] }
 0x2b6   :  { %533 = vmatpush.msrb.mxu2 %v504_v51 }
 0x2ba   :  { %v1011_v52 = vpop.eup %1010 }
 0x2bb   :  { %v279_v53 = vpop.xlane.xlu0 %278  ;;  %v288_v54 = vmul.f32 %v1011_v52, %v1003_v23  ;;  %v503_v52 = vld [vmem:[#allocation2 + $0x188] sm:$0xff] }
 0x2bc   :  { %1012 = vrcp.f32 %v279_v53  ;;  %534 = vmatpush.msrb.mxu2 %v503_v52  ;;  %v502_v53 = vld [vmem:[#allocation2 + $0x180] sm:$0xff] }
 0x2bd   :  { %950 = vmatmul.msk.f32.gmra.mxu0 %vm144_vm0, %v288_v54 }
 0x2be   :  { %535 = vmatpush.msrb.mxu2 %v502_v53  ;;  %v557_v53 = vld [vmem:[#allocation2 + $0x1c0] sm:$0xff] }
 0x2c2   :  { %v1013_v55 = vpop.eup %1012  ;;  %v1172_v0 = vpop.f32.mrf.mxu0 }
 0x2c3   :  { %v282_v56 = vpop.xlane.xlu1 %281  ;;  %v289_v57 = vmul.f32 %v1013_v55, %v1005_v35  ;;  %v1178_v5 = vpop.f32.mrf.mxu1 }
 0x2c4   :  { %1014 = vrcp.f32 %v282_v56 }
 0x2c5   :  { %951 = vmatmul.msk.f32.gmra.mxu0 %vm144_vm0, %v289_v57  ;;  %1016 = vrcp.f32 %v1067_v26 }
 0x2ca   :  { %v1015_v58 = vpop.eup %1014 }
 0x2cb   :  { %v290_v59 = vmul.f32 %v1015_v58, %v1007_v41 }
 0x2cd   :  { %952 = vmatmul.msk.f32.gmra.mxu0 %vm144_vm0, %v290_v59 }
 0x332   :  { %v332_v1 = vpop.f32.mrf.mxu0 }
 0x333   :  { %953 = vmatmul.msk.f32.vlgmr.msrb.gmra.mxu1 %vm144_vm0, %v332_v1 }
 0x33a   :  { %v335_v2 = vpop.f32.mrf.mxu0 }
 0x33b   :  { %954 = vmatmul.msk.f32.gmra.mxu1 %vm144_vm0, %v335_v2 }
 0x342   :  { %v338_v3 = vpop.f32.mrf.mxu0 }
 0x343   :  { %955 = vmatmul.msk.f32.gmra.mxu1 %vm144_vm0, %v338_v3 }
 0x34a   :  { %v341_v4 = vpop.f32.mrf.mxu0 }
 0x34b   :  { %956 = vmatmul.msk.f32.gmra.mxu1 %vm144_vm0, %v341_v4 }
 0x3b0   :  { %v379_v8 = vpop.f32.mrf.mxu1 }
 0x3b1   :  { %v380_v10 = vadd.f32 %v988_v7, %v379_v8 }
 0x3b3   :  { %v391_v11 = vadd.f32 %v380_v10, %v1102_v6 }
 0x3b5   :  { %v397_v13 = vsel %vm144_vm0, %v391_v11, 0.0 }
 0x3b6   :  { %398 = vadd.xlane.f32.xlu0 %v397_v13  ;;  %v568_v13 = vld [vmem:[#allocation2 + $0x218] sm:$0xff] }
 0x3b7   :  { %571 = vmatpush.msrb.mxu3 %v568_v13 }
 0x3b8   :  { %v382_v14 = vpop.f32.mrf.mxu1 }
 0x3b9   :  { %v383_v16 = vadd.f32 %v988_v7, %v382_v14  ;;  %v567_v14 = vld [vmem:[#allocation2 + $0x210] sm:$0xff] }
 0x3ba   :  { %572 = vmatpush.msrb.mxu3 %v567_v14 }
 0x3bb   :  { %v392_v17 = vadd.f32 %v383_v16, %v1109_v9  ;;  %v1017_v9 = vpop.eup %1016 }
 0x3bc   :  { %v410_v27 = vmul.f32 32.0, %v1017_v9  ;;  %vm414_vm1 = vweird.f32 %v1017_v9 }
 0x3bd   :  { %v400_v18 = vsel %vm144_vm0, %v392_v17, 0.0 }
 0x3be   :  { %401 = vadd.xlane.f32.xlu1 %v400_v18  ;;  %v411_v28 = vsub.f32 1.0, %v410_v27 }
 0x3c0   :  { %v385_v19 = vpop.f32.mrf.mxu1  ;;  %v412_v29 = vmul.f32 %v1017_v9, %v411_v28  ;;  %v564_v28 = vld [vmem:[#allocation2 + $0x1f8] sm:$0xff] }
 0x3c1   :  { %v386_v20 = vadd.f32 %v988_v7, %v385_v19  ;;  %v1215_v19 = vld [vmem:[#allocation2 + $0x2d4] ss:$0 sm:$0xff] }
 0x3c2   :  { %v413_v30 = vadd.f32 %v1017_v9, %v412_v29 }
 0x3c3   :  { %v393_v21 = vadd.f32 %v386_v20, %v1116_v12  ;;  %v566_v20 = vld [vmem:[#allocation2 + $0x208] sm:$0xff] }
 0x3c4   :  { %v1188_v31 = vsel %vm414_vm1, %v1017_v9, %v413_v30  ;;  %573 = vmatpush.msrb.mxu3 %v566_v20 }
 0x3c5   :  { %v403_v22 = vsel %vm144_vm0, %v393_v21, 0.0 }
 0x3c6   :  { %404 = vadd.xlane.f32.xlu0 %v403_v22 }
 0x3c8   :  { %v388_v23 = vpop.f32.mrf.mxu1 }
 0x3c9   :  { %v389_v24 = vadd.f32 %v988_v7, %v388_v23 }
 0x3cb   :  { %v394_v6 = vadd.f32 %v389_v24, %v1123_v15 }
 0x3cd   :  { %v406_v25 = vsel %vm144_vm0, %v394_v6, 0.0 }
 0x3ce   :  { %407 = vadd.xlane.f32.xlu1 %v406_v25 }
 0x429   :  { %v399_v12 = vpop.xlane.xlu0 %398 }
 0x42a   :  { %v416_v33 = vmul.f32 %v1188_v31, %v399_v12  ;;  %v563_v12 = vld [vmem:[#allocation2 + $0x1f0] sm:$0xff] }
 0x42c   :  { %v420_v34 = vsub.f32 %v391_v11, %v416_v33  ;;  %v1213_v11 = vld [vmem:[#allocation2 + $0x2d3] ss:$0 sm:$0xff] }
 0x42e   :  { %v424_v15 = vmul.f32 %v420_v34, %v420_v34 }
 0x430   :  { %v428_v35 = vsel %vm144_vm0, %v424_v15, 0.0  ;;  %v562_v15 = vld [vmem:[#allocation2 + $0x1e8] sm:$0xff] }
 0x431   :  { %v402_v36 = vpop.xlane.xlu1 %401  ;;  %429 = vadd.xlane.f32.xlu0 %v428_v35 }
 0x432   :  { %v417_v37 = vmul.f32 %v1188_v31, %v402_v36 }
 0x434   :  { %v1193_v38 = vsub.f32 %v392_v17, %v417_v37  ;;  %v561_v37 = vld [vmem:[#allocation2 + $0x1e0] sm:$0xff] }
 0x436   :  { %v425_v39 = vmul.f32 %v1193_v38, %v1193_v38 }
 0x438   :  { %v431_v40 = vsel %vm144_vm0, %v425_v39, 0.0 }
 0x439   :  { %v405_v41 = vpop.xlane.xlu0 %404  ;;  %432 = vadd.xlane.f32.xlu1 %v431_v40 }
 0x43a   :  { %v418_v42 = vmul.f32 %v1188_v31, %v405_v41 }
 0x43c   :  { %v1199_v43 = vsub.f32 %v393_v21, %v418_v42  ;;  %v560_v42 = vld [vmem:[#allocation2 + $0x1d8] sm:$0xff] }
 0x43e   :  { %v426_v44 = vmul.f32 %v1199_v43, %v1199_v43 }
 0x440   :  { %v434_v45 = vsel %vm144_vm0, %v426_v44, 0.0 }
 0x441   :  { %435 = vadd.xlane.f32.xlu0 %v434_v45  ;;  %v408_v46 = vpop.xlane.xlu1 %407 }
 0x442   :  { %v419_v47 = vmul.f32 %v1188_v31, %v408_v46 }
 0x444   :  { %v1205_v48 = vsub.f32 %v394_v6, %v419_v47  ;;  %v565_v6 = vld [vmem:[#allocation2 + $0x200] sm:$0xff] }
 0x445   :  { %574 = vmatpush.msrb.mxu3 %v565_v6 }
 0x446   :  { %v427_v49 = vmul.f32 %v1205_v48, %v1205_v48 }
 0x447   :  { %575 = vmatpush.msrb.mxu3 %v564_v28 }
 0x448   :  { %v437_v50 = vsel %vm144_vm0, %v427_v49, 0.0 }
 0x449   :  { %438 = vadd.xlane.f32.xlu1 %v437_v50  ;;  %576 = vmatpush.msrb.mxu3 %v563_v12  ;;  %v558_v50 = vld [vmem:[#allocation2 + $0x1c8] sm:$0xff] }
 0x44b   :  { %577 = vmatpush.msrb.mxu3 %v562_v15 }
 0x44d   :  { %578 = vmatpush.msrb.mxu3 %v561_v37 }
 0x44f   :  { %579 = vmatpush.msrb.mxu3 %v560_v42 }
 0x4a4   :  { %v430_v54 = vpop.xlane.xlu0 %429 }
 0x4a5   :  { %v440_v55 = vmul.f32 %v430_v54, %v1188_v31 }
 0x4a7   :  { %v444_v56 = vadd.f32 1e-05, %v440_v55 }
 0x4a9   :  { %1018 = vrsqrt.f32 %v444_v56  ;;  %vm454_vm3 = vweird.f32 %v444_v56 }
 0x4ac   :  { %v433_v57 = vpop.xlane.xlu1 %432 }
 0x4ad   :  { %v441_v58 = vmul.f32 %v433_v57, %v1188_v31 }
 0x4af   :  { %v1019_v59 = vpop.eup %1018  ;;  %v445_v60 = vadd.f32 1e-05, %v441_v58  ;;  %v555_v58 = vld [vmem:[#allocation2 + $0x1b0] sm:$0xff] }
 0x4b0   :  { %v449_v61 = vmul.f32 %v1019_v59, %v444_v56  ;;  %vm455_vm2 = vweird.f32 %v1019_v59  ;;  %v556_v56 = vld [vmem:[#allocation2 + $0x1b8] sm:$0xff] }
 0x4b1   :  { %1020 = vrsqrt.f32 %v445_v60  ;;  %vm456_vm4 = vmor %vm454_vm3, %vm455_vm2  ;;  %vm464_vm6 = vweird.f32 %v445_v60 }
 0x4b2   :  { %v450_v62 = vmul.f32 %v1019_v59, %v449_v61 }
 0x4b4   :  { %v451_v63 = vmul.f32 0.5, %v450_v62  ;;  %v436_v1 = vpop.xlane.xlu0 %435  ;;  %v554_v62 = vld [vmem:[#allocation2 + $0x1a8] sm:$0xff] }
 0x4b5   :  { %v442_v2 = vmul.f32 %v436_v1, %v1188_v31  ;;  %v991_v1 = vld [vmem:[#allocation2 + $0x2d5] ss:$0 sm:$0xff] }
 0x4b6   :  { %v452_v3 = vsub.f32 1.5, %v451_v63  ;;  %v553_v63 = vld [vmem:[#allocation2 + $0x1a0] sm:$0xff] }
 0x4b7   :  { %v1021_v4 = vpop.eup %1020  ;;  %v446_v7 = vadd.f32 1e-05, %v442_v2 }
 0x4b8   :  { %v453_v8 = vmul.f32 %v1019_v59, %v452_v3  ;;  %v459_v10 = vmul.f32 %v1021_v4, %v445_v60  ;;  %vm465_vm5 = vweird.f32 %v1021_v4 }
 0x4b9   :  { %1022 = vrsqrt.f32 %v446_v7  ;;  %vm466_vm7 = vmor %vm464_vm6, %vm465_vm5  ;;  %vm474_vm9 = vweird.f32 %v446_v7 }
 0x4ba   :  { %v457_v16 = vsel %vm456_vm4, %v1019_v59, %v453_v8  ;;  %v460_v17 = vmul.f32 %v1021_v4, %v459_v10 }
 0x4bb   :  { %v488_v18 = vmul.f32 %v457_v16, %v420_v34 }
 0x4bc   :  { %v461_v21 = vmul.f32 0.5, %v460_v17  ;;  %v439_v22 = vpop.xlane.xlu1 %438 }
 0x4bd   :  { %v443_v23 = vmul.f32 %v439_v22, %v1188_v31  ;;  %v493_v24 = vmul.f32 %v1213_v11, %v488_v18  ;;  %v992_v18 = vld [vmem:[#allocation2 + $0x2d6] ss:$0 sm:$0xff] }
 0x4be   :  { %v462_v25 = vsub.f32 1.5, %v461_v21 }
 0x4bf   :  { %v1023_v26 = vpop.eup %1022  ;;  %v447_v9 = vadd.f32 1e-05, %v443_v23  ;;  %v1220_v27 = vadd.f32 %v1215_v19, %v493_v24 }
 0x4c0   :  { %v463_v29 = vmul.f32 %v1021_v4, %v462_v25  ;;  %v469_v30 = vmul.f32 %v1023_v26, %v446_v7  ;;  %vm475_vm8 = vweird.f32 %v1023_v26 }
 0x4c1   :  { %1024 = vrsqrt.f32 %v447_v9  ;;  %957 = vmatmul.msk.f32.vlgmr.msrb.gmra.mxu2 %vm144_vm0, %v1220_v27  ;;  %vm476_vm10 = vmor %vm474_vm9, %vm475_vm8  ;;  %vm484_vm12 = vweird.f32 %v447_v9 }
 0x4c2   :  { %v467_v32 = vsel %vm466_vm7, %v1021_v4, %v463_v29  ;;  %v470_v33 = vmul.f32 %v1023_v26, %v469_v30  ;;  %v987_v30 = vld [vmem:[#allocation2 + $0x2d0] ss:$0 sm:$0xff] }
 0x4c3   :  { %v489_v34 = vmul.f32 %v467_v32, %v1193_v38  ;;  %v559_v38 = vld [vmem:[#allocation2 + $0x1d0] sm:$0xff] }
 0x4c4   :  { %v471_v35 = vmul.f32 0.5, %v470_v33  ;;  %580 = vmatpush.msrb.mxu3 %v559_v38  ;;  %v92_v33 = vadd.f32 %v987_v30, %v1172_v0 }
 0x4c5   :  { %v494_v36 = vmul.f32 %v1213_v11, %v489_v34 }
 0x4c6   :  { %v472_v39 = vsub.f32 1.5, %v471_v35  ;;  %581 = vmatpush.msrb.mxu3 %v558_v50  ;;  %v112_v15 = vadd.f32 %v1178_v5, %v92_v33 }
 0x4c7   :  { %v1025_v40 = vpop.eup %1024  ;;  %v1227_v41 = vadd.f32 %v1215_v19, %v494_v36 }
 0x4c8   :  { %v473_v44 = vmul.f32 %v1023_v26, %v472_v39  ;;  %v479_v45 = vmul.f32 %v1025_v40, %v447_v9  ;;  %vm485_vm11 = vweird.f32 %v1025_v40  ;;  %582 = vmatpush.msrb.mxu3 %v557_v53 }
 0x4c9   :  { %958 = vmatmul.msk.f32.gmra.mxu2 %vm144_vm0, %v1227_v41  ;;  %vm486_vm13 = vmor %vm484_vm12, %vm485_vm11  ;;  %vm727_vm11 = vcmask 1041409   ;;  %vm729_vm12 = vcmask 1042434  }
 0x4ca   :  { %v477_v46 = vsel %vm476_vm10, %v1023_v26, %v473_v44  ;;  %v480_v47 = vmul.f32 %v1025_v40, %v479_v45  ;;  %583 = vmatpush.msrb.mxu3 %v556_v56 }
 0x4cb   :  { %v490_v49 = vmul.f32 %v477_v46, %v1199_v43 }
 0x4cc   :  { %v481_v51 = vmul.f32 0.5, %v480_v47  ;;  %584 = vmatpush.msrb.mxu3 %v555_v58 }
 0x4cd   :  { %v495_v52 = vmul.f32 %v1213_v11, %v490_v49 }
 0x4ce   :  { %v482_v54 = vsub.f32 1.5, %v481_v51  ;;  %585 = vmatpush.msrb.mxu3 %v554_v62 }
 0x4cf   :  { %v500_v55 = vadd.f32 %v1215_v19, %v495_v52 }
 0x4d0   :  { %v483_v57 = vmul.f32 %v1025_v40, %v482_v54  ;;  %586 = vmatpush.msrb.mxu3 %v553_v63 }
 0x4d1   :  { %959 = vmatmul.msk.f32.gmra.mxu2 %vm144_vm0, %v500_v55 }
 0x4d2   :  { %v487_v43 = vsel %vm486_vm13, %v1025_v40, %v483_v57 }
 0x4d3   :  { %v491_v59 = vmul.f32 %v487_v43, %v1205_v48 }
 0x4d5   :  { %v496_v60 = vmul.f32 %v1213_v11, %v491_v59 }
 0x4d7   :  { %v501_v61 = vadd.f32 %v1215_v19, %v496_v60 }
 0x4d9   :  { %960 = vmatmul.msk.f32.gmra.mxu2 %vm144_vm0, %v501_v61 }
 0x544   :  { %v537_v2 = vpop.f32.mrf.mxu2 }
 0x545   :  { %v538_v3 = vadd.f32 %v991_v1, %v537_v2 }
 0x547   :  { %v549_v4 = vmax.f32 %v538_v3, 0.0 }
 0x549   :  { %587 = vmatmul.f32.vlgmr.msrb.gmra.mxu3 %v549_v4 }
 0x54c   :  { %v540_v7 = vpop.f32.mrf.mxu2 }
 0x54d   :  { %v541_v8 = vadd.f32 %v991_v1, %v540_v7  ;;  %v993_v7 = vld [vmem:[#allocation2 + $0x2d7] ss:$0 sm:$0xff] }
 0x54f   :  { %v550_v10 = vmax.f32 %v541_v8, 0.0 }
 0x551   :  { %590 = vmatmul.f32.gmra.mxu3 %v550_v10 }
 0x554   :  { %v543_v48 = vpop.f32.mrf.mxu2 }
 0x555   :  { %v544_v13 = vadd.f32 %v991_v1, %v543_v48  ;;  %v994_v48 = vld [vmem:[#allocation2 + $0x2d8] ss:$0 sm:$0xff] }
 0x557   :  { %v551_v11 = vmax.f32 %v544_v13, 0.0 }
 0x559   :  { %593 = vmatmul.f32.gmra.mxu3 %v551_v11 }
 0x55c   :  { %v546_v14 = vpop.f32.mrf.mxu2 }
 0x55d   :  { %v547_v16 = vadd.f32 %v991_v1, %v546_v14 }
 0x55f   :  { %v552_v17 = vmax.f32 %v547_v16, 0.0 }
 0x561   :  { %596 = vmatmul.f32.gmra.mxu3 %v552_v17 }
 0x5cc   :  { %v588_v19 = vpop.f32.mrf.mxu3 }
 0x5cd   :  { %v589_v20 = vadd.f32 %v992_v18, %v588_v19 }
 0x5cf   :  { %v600_v21 = vadd.f32 %v589_v20, %v1220_v27 }
 0x5d1   :  { %v606_v22 = vsel %vm144_vm0, %v600_v21, 0.0 }
 0x5d2   :  { %607 = vadd.xlane.f32.xlu2 %v606_v22 }
 0x5d4   :  { %v591_v23 = vpop.f32.mrf.mxu3 }
 0x5d5   :  { %v592_v24 = vadd.f32 %v992_v18, %v591_v23 }
 0x5d7   :  { %v601_v6 = vadd.f32 %v592_v24, %v1227_v41 }
 0x5d9   :  { %v609_v25 = vsel %vm144_vm0, %v601_v6, 0.0 }
 0x5da   :  { %610 = vadd.xlane.f32.xlu0 %v609_v25 }
 0x5dc   :  { %v594_v26 = vpop.f32.mrf.mxu3 }
 0x5dd   :  { %v595_v9 = vadd.f32 %v992_v18, %v594_v26 }
 0x5df   :  { %v602_v28 = vadd.f32 %v595_v9, %v500_v55 }
 0x5e1   :  { %v612_v29 = vsel %vm144_vm0, %v602_v28, 0.0 }
 0x5e2   :  { %613 = vadd.xlane.f32.xlu1 %v612_v29 }
 0x5e4   :  { %v597_v12 = vpop.f32.mrf.mxu3 }
 0x5e5   :  { %v598_v32 = vadd.f32 %v992_v18, %v597_v12 }
 0x5e7   :  { %v603_v27 = vadd.f32 %v598_v32, %v501_v61 }
 0x5e9   :  { %v615_v34 = vsel %vm144_vm0, %v603_v27, 0.0 }
 0x5ea   :  { %616 = vadd.xlane.f32.xlu2 %v615_v34 }
 0x5ee   :  { %114 = vrot.lane.b32.xlu0 %v112_v15, %s1066_s1 }
 0x645   :  { %v608_v35 = vpop.xlane.xlu2 %607 }
 0x646   :  { %v618_v36 = vmul.f32 %v608_v35, %v1188_v31 }
 0x648   :  { %v622_v37 = vsub.f32 %v600_v21, %v618_v36 }
 0x64a   :  { %v626_v39 = vmul.f32 %v622_v37, %v622_v37 }
 0x64c   :  { %v630_v40 = vsel %vm144_vm0, %v626_v39, 0.0 }
 0x64d   :  { %631 = vadd.xlane.f32.xlu1 %v630_v40  ;;  %v611_v41 = vpop.xlane.xlu0 %610 }
 0x64e   :  { %v619_v42 = vmul.f32 %v611_v41, %v1188_v31 }
 0x650   :  { %v1251_v44 = vsub.f32 %v601_v6, %v619_v42 }
 0x652   :  { %v627_v0 = vmul.f32 %v1251_v44, %v1251_v44 }
 0x654   :  { %v633_v5 = vsel %vm144_vm0, %v627_v0, 0.0 }
 0x655   :  { %634 = vadd.xlane.f32.xlu2 %v633_v5  ;;  %v614_v45 = vpop.xlane.xlu1 %613 }
 0x656   :  { %v620_v38 = vmul.f32 %v614_v45, %v1188_v31 }
 0x658   :  { %v624_v46 = vsub.f32 %v602_v28, %v620_v38 }
 0x65a   :  { %v628_v47 = vmul.f32 %v624_v46, %v624_v46 }
 0x65c   :  { %v636_v49 = vsel %vm144_vm0, %v628_v47, 0.0 }
 0x65d   :  { %v617_v50 = vpop.xlane.xlu2 %616  ;;  %637 = vadd.xlane.f32.xlu1 %v636_v49 }
 0x65e   :  { %v621_v51 = vmul.f32 %v617_v50, %v1188_v31 }
 0x660   :  { %v1259_v52 = vsub.f32 %v603_v27, %v621_v51  ;;  %v115_v55 = vpop.permute.xlu0 %114 }
 0x661   :  { %v116_v56 = vmax.f32 %v112_v15, %v115_v55  ;;  %v738_v55 = vld [vmem:[#allocation2 + $0x230] sm:$0xff] }
 0x662   :  { %v629_v53 = vmul.f32 %v1259_v52, %v1259_v52  ;;  %758 = vmatpush.msra.mxu0 %v738_v55 }
 0x664   :  { %v639_v54 = vsel %vm144_vm0, %v629_v53, 0.0 }
 0x665   :  { %640 = vadd.xlane.f32.xlu2 %v639_v54 }
 0x676   :  { %117 = vrot.lane.b32.xlu1 %v116_v56, %s1068_s0 }
 0x6c0   :  { %v632_v57 = vpop.xlane.xlu1 %631 }
 0x6c1   :  { %v642_v58 = vmul.f32 %v632_v57, %v1188_v31  ;;  %v775_v57 = vld [vmem:[#allocation2 + $0x270] sm:$0xff] }
 0x6c2   :  { %790 = vmatpush.msra.mxu1 %v775_v57  ;;  %v998_v57 = vld [vmem:[#allocation2 + $0x2dc] ss:$0 sm:$0xff] }
 0x6c3   :  { %v646_v43 = vadd.f32 1e-05, %v642_v58  ;;  %v774_v58 = vld [vmem:[#allocation2 + $0x268] sm:$0xff] }
 0x6c4   :  { %791 = vmatpush.msra.mxu1 %v774_v58 }
 0x6c5   :  { %1026 = vrsqrt.f32 %v646_v43  ;;  %vm656_vm15 = vweird.f32 %v646_v43 }
 0x6c8   :  { %v635_v16 = vpop.xlane.xlu2 %634 }
 0x6c9   :  { %v643_v20 = vmul.f32 %v635_v16, %v1188_v31 }
 0x6cb   :  { %v1027_v59 = vpop.eup %1026  ;;  %v647_v23 = vadd.f32 1e-05, %v643_v20 }
 0x6cc   :  { %v651_v60 = vmul.f32 %v1027_v59, %v646_v43  ;;  %vm657_vm14 = vweird.f32 %v1027_v59  ;;  %v773_v43 = vld [vmem:[#allocation2 + $0x260] sm:$0xff] }
 0x6cd   :  { %vm658_vm1 = vmor %vm656_vm15, %vm657_vm14  ;;  %vm666_vm6 = vweird.f32 %v647_v23  ;;  %792 = vmatpush.msra.mxu1 %v773_v43  ;;  %vm731_vm14 = vcmask 1043459   ;;  %vm734_vm15 = vcmask 130048  }
 0x6ce   :  { %v652_v61 = vmul.f32 %v1027_v59, %v651_v60  ;;  %v770_v60 = vld [vmem:[#allocation2 + $0x248] sm:$0xff] }
 0x6d0   :  { %v653_v62 = vmul.f32 0.5, %v652_v61  ;;  %v638_v63 = vpop.xlane.xlu1 %637  ;;  %v769_v61 = vld [vmem:[#allocation2 + $0x240] sm:$0xff] }
 0x6d1   :  { %v644_v1 = vmul.f32 %v638_v63, %v1188_v31  ;;  %v720_v63 = vlaneseq }
 0x6d2   :  { %v654_v2 = vsub.f32 1.5, %v653_v62 }
 0x6d3   :  { %v648_v3 = vadd.f32 1e-05, %v644_v1  ;;  %v721_v1 = vand.u32 127, %v720_v63 }
 0x6d4   :  { %v655_v4 = vmul.f32 %v1027_v59, %v654_v2 }
 0x6d5   :  { %1028 = vrsqrt.f32 %v648_v3  ;;  %vm676_vm3 = vweird.f32 %v648_v3 }
 0x6d6   :  { %v659_v8 = vsel %vm658_vm1, %v1027_v59, %v655_v4  ;;  %1030 = vrsqrt.f32 %v647_v23  ;;  %v771_v59 = vld [vmem:[#allocation2 + $0x250] sm:$0xff]  ;;  %vm741_vm1 = vcmask 195584  }
 0x6d7   :  { %v690_v10 = vmul.f32 %v659_v8, %v622_v37 }
 0x6d8   :  { %v641_v6 = vpop.xlane.xlu2 %640 }
 0x6d9   :  { %v695_v13 = vmul.f32 %v993_v7, %v690_v10  ;;  %v645_v26 = vmul.f32 %v641_v6, %v1188_v31 }
 0x6db   :  { %v1029_v11 = vpop.eup %1028  ;;  %v700_v14 = vadd.f32 %v994_v48, %v695_v13  ;;  %v649_v12 = vadd.f32 1e-05, %v645_v26 }
 0x6dc   :  { %v671_v17 = vmul.f32 %v1029_v11, %v648_v3  ;;  %vm677_vm2 = vweird.f32 %v1029_v11  ;;  %v1031_v27 = vpop.eup %1030  ;;  %v722_v3 = vadd.s32 4294967280, %v721_v1 }
 0x6dd   :  { %v704_v18 = vsel %vm144_vm0, %v700_v14, -inf  ;;  %vm678_vm4 = vmor %vm676_vm3, %vm677_vm2  ;;  %1032 = vrsqrt.f32 %v649_v12  ;;  %v661_v34 = vmul.f32 %v1031_v27, %v647_v23  ;;  %vm667_vm5 = vweird.f32 %v1031_v27  ;;  %v995_v23 = vld [vmem:[#allocation2 + $0x2d9] ss:$0 sm:$0xff] }
 0x6de   :  { %v672_v19 = vmul.f32 %v1029_v11, %v671_v17  ;;  %705 = vmax.xlane.f32.xlu0 %v704_v18  ;;  %vm668_vm7 = vmor %vm666_vm6, %vm667_vm5  ;;  %vm686_vm9 = vweird.f32 %v649_v12  ;;  %vm778_vm3 = vcmask 523264   ;;  %vm833_vm5 = vcmask 392192  }
 0x6df   :  { %v662_v15 = vmul.f32 %v1031_v27, %v661_v34  ;;  %v830_v34 = vld [vmem:[#allocation2 + $0x2a0] sm:$0xff]  ;;  %vm899_vm6 = vcmask 1043456  }
 0x6e0   :  { %v673_v21 = vmul.f32 0.5, %v672_v19  ;;  %847 = vmatpush.msra.mxu2 %v830_v34 }
 0x6e1   :  { %v663_v31 = vmul.f32 0.5, %v662_v15  ;;  %v829_v15 = vld [vmem:[#allocation2 + $0x298] sm:$0xff] }
 0x6e2   :  { %v674_v22 = vsub.f32 1.5, %v673_v21  ;;  %848 = vmatpush.msra.mxu2 %v829_v15 }
 0x6e3   :  { %v1033_v35 = vpop.eup %1032  ;;  %v664_v37 = vsub.f32 1.5, %v663_v31  ;;  %v827_v31 = vld [vmem:[#allocation2 + $0x288] sm:$0xff] }
 0x6e4   :  { %v675_v24 = vmul.f32 %v1029_v11, %v674_v22  ;;  %v681_v36 = vmul.f32 %v1033_v35, %v649_v12  ;;  %vm687_vm8 = vweird.f32 %v1033_v35  ;;  %v768_v22 = vld [vmem:[#allocation2 + $0x238] sm:$0xff] }
 0x6e5   :  { %v665_v40 = vmul.f32 %v1031_v27, %v664_v37  ;;  %vm688_vm10 = vmor %vm686_vm9, %vm687_vm8  ;;  %v825_v37 = vld [vmem:[#allocation2 + $0x278] sm:$0xff]  ;;  %vm895_vm8 = vcmask 97280   ;;  %vm927_vm9 = vcmask 31744  }
 0x6e6   :  { %v679_v25 = vsel %vm678_vm4, %v1029_v11, %v675_v24  ;;  %v682_v39 = vmul.f32 %v1033_v35, %v681_v36  ;;  %v826_v36 = vld [vmem:[#allocation2 + $0x280] sm:$0xff] }
 0x6e7   :  { %v692_v9 = vmul.f32 %v679_v25, %v624_v46  ;;  %v669_v0 = vsel %vm668_vm7, %v1031_v27, %v665_v40 }
 0x6e8   :  { %v118_v28 = vpop.permute.xlu1 %117  ;;  %v683_v41 = vmul.f32 0.5, %v682_v39  ;;  %v691_v5 = vmul.f32 %v669_v0, %v1251_v44  ;;  %v736_v44 = vld [vmem:[#allocation2 + $0x220] sm:$0xff]  ;;  %v805_v39 = vld [vmem:[%s1295_s2] sm:$0xf] }
 0x6e9   :  { %v1269_v29 = vmax.f32 %v116_v56, %v118_v28  ;;  %v697_v30 = vmul.f32 %v993_v7, %v692_v9  ;;  %v737_v56 = vld [vmem:[#allocation2 + $0x228] sm:$0xff]  ;;  %v996_v9 = vld [vmem:[#allocation2 + $0x2da] ss:$0 sm:$0xff] }
 0x6ea   :  { %v684_v42 = vsub.f32 1.5, %v683_v41  ;;  %v696_v38 = vmul.f32 %v993_v7, %v691_v5  ;;  %759 = vmatpush.msra.mxu0 %v737_v56  ;;  %v862_v0 = vld [vmem:[#allocation2 + $0x2b8] sm:$0xff] }
 0x6eb   :  { %120 = vrot.lane.b32.xlu2 %v1269_v29, %s1069_s6  ;;  %v702_v32 = vadd.f32 %v994_v48, %v697_v30 }
 0x6ec   :  { %v685_v45 = vmul.f32 %v1033_v35, %v684_v42  ;;  %v701_v47 = vadd.f32 %v994_v48, %v696_v38  ;;  %760 = vmatpush.msra.mxu0 %v736_v44  ;;  %v891_v44 = vld [vmem:[#allocation2 + $0x2c0] sm:$0xff] }
 0x6ed   :  { %v710_v33 = vsel %vm144_vm0, %v702_v32, -inf }
 0x6ee   :  { %711 = vmax.xlane.f32.xlu1 %v710_v33  ;;  %v689_v46 = vsel %vm688_vm10, %v1033_v35, %v685_v45  ;;  %v707_v50 = vsel %vm144_vm0, %v701_v47, -inf  ;;  %v828_v35 = vld [vmem:[#allocation2 + $0x290] sm:$0xff]  ;;  %881 = vmatpush.msrb.mxu0 %v862_v0  ;;  %vm929_vm10 = vcmask 556032  }
 0x6ef   :  { %v693_v49 = vmul.f32 %v689_v46, %v1259_v52  ;;  %v772_v52 = vld [vmem:[#allocation2 + $0x258] sm:$0xff]  ;;  %849 = vmatpush.msra.mxu2 %v828_v35  ;;  %v861_v47 = vld [vmem:[#allocation2 + $0x2b0] sm:$0xff] }
 0x6f0   :  { %793 = vmatpush.msra.mxu1 %v772_v52  ;;  %882 = vmatpush.msrb.mxu0 %v861_v47 }
 0x6f1   :  { %v698_v51 = vmul.f32 %v993_v7, %v693_v49  ;;  %850 = vmatpush.msra.mxu2 %v827_v31  ;;  %v860_v49 = vld [vmem:[#allocation2 + $0x2a8] sm:$0xff] }
 0x6f2   :  { %794 = vmatpush.msra.mxu1 %v771_v59  ;;  %883 = vmatpush.msrb.mxu0 %v860_v49 }
 0x6f3   :  { %v703_v53 = vadd.f32 %v994_v48, %v698_v51  ;;  %851 = vmatpush.msra.mxu2 %v826_v36  ;;  %v997_v51 = vld [vmem:[#allocation2 + $0x2db] ss:$0 sm:$0xff] }
 0x6f4   :  { %795 = vmatpush.msra.mxu1 %v770_v60  ;;  %v999_v60 = vld [vmem:[#allocation2 + $0x2dd] ss:$0 sm:$0xff] }
 0x6f5   :  { %v713_v54 = vsel %vm144_vm0, %v703_v53, -inf  ;;  %852 = vmatpush.msra.mxu2 %v825_v37 }
 0x6f6   :  { %796 = vmatpush.msra.mxu1 %v769_v61 }
 0x6f8   :  { %797 = vmatpush.msra.mxu1 %v768_v22 }
 0x714   :  { %708 = vmax.xlane.f32.xlu2 %v707_v50  ;;  %v892_v50 = vld [vmem:[#allocation2 + $0x2c8] sm:$0xf] }
 0x715   :  { %965 = vmatpush.msk.msrb.mxu1 %vm899_vm6, %v892_v50 }
 0x717   :  { %918 = vmatpush.msrb.mxu1 %v891_v44 }
 0x71c   :  { %714 = vmax.xlane.f32.xlu2 %v713_v54 }
 0x745   :  { %v121_v62 = vpop.permute.xlu2 %120 }
 0x746   :  { %v122_v7 = vmax.f32 %v1269_v29, %v121_v62 }
 0x748   :  { %v124_v13 = vmul.f32 0.01, %v122_v7  ;;  %vm123_vm13 = vcmp.gt.f32.partialorder %v122_v7, 0.0 }
 0x74a   :  { %v125_v19 = vsel %vm123_vm13, %v122_v7, %v124_v13 }
 0x751   :  { %v706_v4 = vpop.xlane.xlu0 %705 }
 0x752   :  { %v723_v10 = vperm.slane %v706_v4, %v722_v3 }
 0x761   :  { %v712_v48 = vpop.xlane.xlu1 %711 }
 0x762   :  { %v725_v14 = vperm.slane %v712_v48, %v722_v3 }
 0x787   :  { %v709_v2 = vpop.xlane.xlu2 %708 }
 0x788   :  { %v724_v8 = vperm.slane %v709_v2, %v722_v3 }
 0x78a   :  { %v728_v11 = vsel %vm727_vm11, %v724_v8, %v723_v10 }
 0x78b   :  { %v730_v18 = vsel %vm729_vm12, %v725_v14, %v728_v11 }
 0x78f   :  { %v715_v16 = vpop.xlane.xlu2 %714 }
 0x790   :  { %v726_v17 = vperm.slane %v715_v16, %v722_v3 }
 0x792   :  { %v732_v20 = vsel %vm731_vm14, %v726_v17, %v730_v18 }
 0x793   :  { %v735_v21 = vsel %vm734_vm15, %v125_v19, %v732_v20 }
 0x794   :  { %961 = vmatmul.msk.f32.vlgmr.msra.gmra.mxu0 %vm741_vm1, %v735_v21 }
 0x811   :  { %v762_v24 = vpop.f32.mrf.mxu0 }
 0x812   :  { %v763_v6 = vadd.f32 %v995_v23, %v762_v24 }
 0x814   :  { %vm765_vm2 = vcmp.gt.f32.partialorder %v763_v6, 0.0  ;;  %v766_v25 = vmul.f32 0.01, %v763_v6 }
 0x816   :  { %v767_v26 = vsel %vm765_vm2, %v763_v6, %v766_v25 }
 0x817   :  { %962 = vmatmul.msk.f32.vlgmr.msra.gmra.mxu1 %vm778_vm3, %v767_v26 }
 0x894   :  { %v799_v28 = vpop.f32.mrf.mxu1 }
 0x895   :  { %v800_v29 = vadd.f32 %v996_v9, %v799_v28 }
 0x897   :  { %vm802_vm4 = vcmp.gt.f32.partialorder %v800_v29, 0.0  ;;  %v803_v30 = vmul.f32 0.01, %v800_v29 }
 0x899   :  { %v804_v12 = vsel %vm802_vm4, %v800_v29, %v803_v30 }
 0x89a   :  { %v806_v32 = vmul.f32 0.5, %v804_v12 }
 0x89c   :  { %v807_v27 = vmul.f32 1.442695, %v806_v32 }
 0x89e   :  { %1034 = vpow2.f32 %v807_v27 }
 0x8a4   :  { %v1035_v33 = vpop.eup %1034 }
 0x8a5   :  { %810 = vrot.lane.b32.xlu0 %v1035_v33, %s1065_s29 }
 0x8ad   :  { %816 = vrot.lane.b32.xlu0 %v125_v19, %s1069_s6 }
 0x8b5   :  { %924 = vrot.lane.b32.xlu0 %v804_v12, %s1070_s7 }
 0x917   :  { %v811_v40 = vpop.permute.xlu0 %810 }
 0x918   :  { %v813_v41 = vmul.f32 %v811_v40, %v805_v39 }
 0x91a   :  { %v814_v42 = vadd.f32 %v813_v41, %v804_v12 }
 0x91c   :  { %820 = vrot.lane.b32.xlu1 %v814_v42, %s1069_s6 }
 0x91f   :  { %v817_v5 = vpop.permute.xlu0 %816 }
 0x920   :  { %v823_v45 = vsel %vm734_vm15, %v814_v42, %v817_v5 }
 0x927   :  { %v925_v63 = vpop.permute.xlu0 %924 }
 0x98e   :  { %v821_v38 = vpop.permute.xlu1 %820 }
 0x98f   :  { %v824_v46 = vsel %vm144_vm0, %v823_v45, %v821_v38 }
 0x990   :  { %963 = vmatmul.msk.f32.vlgmr.msra.gmra.mxu2 %vm833_vm5, %v824_v46 }
 0xa13   :  { %v854_v53 = vpop.f32.mrf.mxu2 }
 0xa14   :  { %v855_v54 = vadd.f32 %v997_v51, %v854_v53 }
 0xa16   :  { %vm857_vm7 = vcmp.gt.f32.partialorder %v855_v54, 0.0  ;;  %v858_v55 = vmul.f32 0.01, %v855_v54 }
 0xa18   :  { %v859_v56 = vsel %vm857_vm7, %v855_v54, %v858_v55 }
 0xa19   :  { %964 = vmatmul.msk.f32.vlgmr.msrb.gmra.mxu0 %vm741_vm1, %v859_v56 }
 0xa96   :  { %v885_v58 = vpop.f32.mrf.mxu0 }
 0xa97   :  { %v886_v43 = vadd.f32 %v998_v57, %v885_v58 }
 0xa99   :  { %vm888_vm0 = vcmp.gt.f32.partialorder %v886_v43, 0.0  ;;  %v889_v52 = vmul.f32 0.01, %v886_v43 }
 0xa9b   :  { %v890_v59 = vsel %vm888_vm0, %v886_v43, %v889_v52 }
 0xa9c   :  { %966 = vmatmul.msk.f32.vlgmr.msrb.gmra.mxu1 %vm895_vm8, %v890_v59 }
 0xb19   :  { %v920_v61 = vpop.f32.mrf.mxu1 }
 0xb1a   :  { %v921_v62 = vadd.f32 %v999_v60, %v920_v61 }
 0xb1c   :  { %v928_v1 = vsel %vm927_vm9, %v921_v62, %v925_v63 }
 0xb1d   :  { %v930_v2 = vsel %vm929_vm10, %v928_v1, 0.0 }
 0xb1e   :  { %931 = vst [vmem:[%s1297_s4] sm:$0xf] %v930_v2 }
 0xb1f   :  { %936 = vsyncpa [#allocation3], 1 }

</bundles_post_ra>
